<compile_context>
chip_gen: v7x
topology: tpu7x:2x2x1
jax: 0.10.0
libtpu: 0.0.40
codegen_flags: <defaults>
</compile_context>

<pallas_src>
import functools

import jax
import jax.numpy as jnp
import numpy as np
from jax import lax
from jax.experimental import pallas as pl
from jax.experimental.pallas import tpu as pltpu

BN_EPS = 1e-5   # PyTorch BatchNorm1d default
C_PAD = 128     # lane-dense padded output width (true C=3 sliced out in wrapper)


def cluster_head_kernel(x_ref, gamma_ref, beta_ref, wt_ref, b_ref, o_ref,
                        sum_ref, sumsq_ref, wfold_ref, bfold_ref, *, n_rows):
    phase = pl.program_id(0)          # 0: batch statistics + BN fold, 1: matmul
    tile = pl.program_id(1)           # row-tile index
    n_tiles = pl.num_programs(1)

    @pl.when(phase == 0)
    def _stats_phase():
        @pl.when(tile == 0)
        def _init():
            sum_ref[...] = jnp.zeros_like(sum_ref)
            sumsq_ref[...] = jnp.zeros_like(sumsq_ref)

        xt = x_ref[...]                                        # (tn, F) f32
        # One-pass moments; zero-padded rows contribute nothing.
        sum_ref[...] += jnp.sum(xt, axis=0, keepdims=True)
        sumsq_ref[...] += jnp.sum(xt * xt, axis=0, keepdims=True)

        @pl.when(tile == n_tiles - 1)
        def _fold_bn():
            inv_n = 1.0 / float(n_rows)                        # true batch size
            mean = sum_ref[...] * inv_n                        # (1, F)
            var = jnp.maximum(sumsq_ref[...] * inv_n - mean * mean, 0.0)
            s = gamma_ref[...] * lax.rsqrt(var + BN_EPS)       # (1, F)
            t = beta_ref[...] - mean * s                       # (1, F)
            # Fold BN scale into the (lane-dense) weight, shift into the bias.
            wfold_ref[...] = wt_ref[...] * jnp.transpose(s)    # (F, C_PAD)
            bfold_ref[...] = (
                jnp.dot(t, wt_ref[...],
                        precision=lax.Precision.HIGHEST,
                        preferred_element_type=jnp.float32)
                + b_ref[...])                                  # (1, C_PAD)

    @pl.when(phase == 1)
    def _matmul_phase():
        o_ref[...] = (
            jnp.dot(x_ref[...], wfold_ref[...],
                    precision=lax.Precision.HIGHEST,
                    preferred_element_type=jnp.float32)
            + bfold_ref[...]).astype(o_ref.dtype)


def cluster_head_forward(x, gamma, beta, w, b):
    """x: (N, F); gamma/beta: (F,); w: (C, F); b: (C,)  ->  (N, C) f32."""
    N, F = x.shape
    C = w.shape[0]
    assert C <= C_PAD

    if x.dtype != jnp.float32:
        x = x.astype(jnp.float32)

    # Row-tile size: multiple of 8, <= 512 rows, and small enough that one
    # double-buffered (tn, F) f32 block is ~2 MiB (v5e 16 MiB scoped VMEM safe).
    # TODO(synk): for very large F (module default feat=8888) also tile the
    # feature axis or raise vmem_limit_bytes.
    budget_rows = max(8, (2 * 1024 * 1024) // (4 * F))
    n_ceil8 = ((N + 7) // 8) * 8
    tn = min(512, budget_rows, n_ceil8)
    tn = max(8, (tn // 8) * 8)
    n_pad = ((N + tn - 1) // tn) * tn
    n_tiles = n_pad // tn

    # Zero-pad the batch to a whole number of row tiles (pad rows add 0 to the
    # moment sums; the mean divisor stays the true N).
    x_p = x if n_pad == N else jnp.pad(x, ((0, n_pad - N), (0, 0)))

    gamma2 = gamma.reshape(1, F).astype(jnp.float32)
    beta2 = beta.reshape(1, F).astype(jnp.float32)
    # Lane-dense weight / bias: pad the C=3 output dim to 128 lanes.
    wt_pad = jnp.zeros((F, C_PAD), jnp.float32).at[:, :C].set(
        w.astype(jnp.float32).T)
    b_pad = jnp.zeros((1, C_PAD), jnp.float32).at[:, :C].set(
        b.astype(jnp.float32))

    kernel = functools.partial(cluster_head_kernel, n_rows=N)

    out_pad = pl.pallas_call(
        kernel,
        out_shape=jax.ShapeDtypeStruct((n_pad, C_PAD), jnp.float32),
        grid_spec=pltpu.PrefetchScalarGridSpec(
            num_scalar_prefetch=0,
            grid=(2, n_tiles),                                   # (phase, row tile)
            in_specs=[
                pl.BlockSpec((tn, F), lambda p, i: (i, 0)),      # x row tile
                pl.BlockSpec((1, F), lambda p, i: (0, 0)),       # gamma
                pl.BlockSpec((1, F), lambda p, i: (0, 0)),       # beta
                pl.BlockSpec((F, C_PAD), lambda p, i: (0, 0)),   # W^T (padded)
                pl.BlockSpec((1, C_PAD), lambda p, i: (0, 0)),   # bias (padded)
            ],
            out_specs=pl.BlockSpec((tn, C_PAD), lambda p, i: (i, 0)),
            scratch_shapes=[
                pltpu.VMEM((1, F), jnp.float32),                 # sum(x)
                pltpu.VMEM((1, F), jnp.float32),                 # sum(x*x)
                pltpu.VMEM((F, C_PAD), jnp.float32),             # BN-folded weight
                pltpu.VMEM((1, C_PAD), jnp.float32),             # BN-folded bias
            ],
        ),
        # Both axes carry sequential state through VMEM scratch (stats
        # accumulate, then feed phase 1), so both stay "arbitrary".
        compiler_params=pltpu.CompilerParams(
            dimension_semantics=("arbitrary", "arbitrary")),
    )(x_p, gamma2, beta2, wt_pad, b_pad)

    return out_pad[:N, :C]


def reference_forward(x, gamma, beta, w, b):
    """Training-mode BatchNorm1d (biased variance) + Linear, in plain JAX."""
    mean = jnp.mean(x, axis=0, keepdims=True)
    var = jnp.mean((x - mean) ** 2, axis=0, keepdims=True)
    y = (x - mean) * lax.rsqrt(var + BN_EPS) * gamma[None, :] + beta[None, :]
    return jnp.dot(y, w.T, precision=lax.Precision.HIGHEST) + b[None, :]


if __name__ == "__main__":
    # Small, module-consistent shapes: batch=12, feat=256, out=3.
    N, F, C = 12, 256, 3
    key = jax.random.PRNGKey(0)
    kx, kg, kb, kw, kbi = jax.random.split(key, 5)

    x = jax.random.normal(kx, (N, F), dtype=jnp.float32)
    gamma = 1.0 + 0.1 * jax.random.normal(kg, (F,), dtype=jnp.float32)
    beta = 0.1 * jax.random.normal(kb, (F,), dtype=jnp.float32)
    w = jax.random.normal(kw, (C, F), dtype=jnp.float32) / jnp.sqrt(F)
    b = 0.1 * jax.random.normal(kbi, (C,), dtype=jnp.float32)

    out = jax.block_until_ready(jax.jit(cluster_head_forward)(x, gamma, beta, w, b))
    ref = jax.block_until_ready(reference_forward(x, gamma, beta, w, b))

    assert out.shape == (N, C)
    max_err = float(np.max(np.abs(np.asarray(out) - np.asarray(ref))))
    assert np.allclose(np.asarray(out), np.asarray(ref), rtol=2e-3, atol=2e-3), max_err

    print("KERNEL_OK")
</pallas_src>

<mosaic_0001>
module attributes {stable_mosaic.version = 11 : i64} {
  func.func @cluster_head_kernel(%arg0: i32, %arg1: i32, %arg2: memref<16x256xf32, #tpu.memory_space<vmem>>, %arg3: memref<1x256xf32, #tpu.memory_space<vmem>>, %arg4: memref<1x256xf32, #tpu.memory_space<vmem>>, %arg5: memref<256x128xf32, #tpu.memory_space<vmem>>, %arg6: memref<1x128xf32, #tpu.memory_space<vmem>>, %arg7: memref<16x128xf32, #tpu.memory_space<vmem>>, %arg8: memref<1x256xf32, #tpu.memory_space<vmem>>, %arg9: memref<1x256xf32, #tpu.memory_space<vmem>>, %arg10: memref<256x128xf32, #tpu.memory_space<vmem>>, %arg11: memref<1x128xf32, #tpu.memory_space<vmem>>) attributes {dimension_semantics = [#tpu.dimension_semantics<arbitrary>, #tpu.dimension_semantics<arbitrary>], iteration_bounds = array<i64: 2, 1>, scalar_prefetch = 0 : i64, scratch_operands = 4 : i64, tpu.core_type = #tpu.core_type<tc>, window_params = [{transform_indices = @transform_0, window_bounds = array<i64: 16, 256>}, {pipeline_mode = #tpu.pipeline_mode<synchronous>, transform_indices = @transform_1, window_bounds = array<i64: 1, 256>}, {pipeline_mode = #tpu.pipeline_mode<synchronous>, transform_indices = @transform_2, window_bounds = array<i64: 1, 256>}, {pipeline_mode = #tpu.pipeline_mode<synchronous>, transform_indices = @transform_3, window_bounds = array<i64: 256, 128>}, {pipeline_mode = #tpu.pipeline_mode<synchronous>, transform_indices = @transform_4, window_bounds = array<i64: 1, 128>}, {transform_indices = @transform_5, window_bounds = array<i64: 16, 128>}]} {
    %c0_i32 = arith.constant 0 : i32
    %0 = arith.cmpi eq, %arg0, %c0_i32 : i32
    %1 = arith.extui %0 : i1 to i32
    %c0_i32_0 = arith.constant 0 : i32
    %2 = arith.cmpi ne, %1, %c0_i32_0 : i32
    scf.if %2 {
      %c0_i32_2 = arith.constant 0 : i32
      %6 = arith.cmpi eq, %arg1, %c0_i32_2 : i32
      %7 = arith.extui %6 : i1 to i32
      %c0_i32_3 = arith.constant 0 : i32
      %8 = arith.cmpi ne, %7, %c0_i32_3 : i32
      scf.if %8 {
        %cst_16 = arith.constant 0.000000e+00 : f32
        %24 = vector.broadcast %cst_16 : f32 to vector<1x256xf32>
        %c0_17 = arith.constant 0 : index
        %c0_18 = arith.constant 0 : index
        %25 = vector.load %arg8[%c0_17, %c0_18] : memref<1x256xf32, #tpu.memory_space<vmem>>, vector<1x256xf32>
        tpu.vector_store %arg8[%c0_17, %c0_18], %24 {strides = array<i32>} : memref<1x256xf32, #tpu.memory_space<vmem>>, vector<1x256xf32>,
        %cst_19 = arith.constant 0.000000e+00 : f32
        %26 = vector.broadcast %cst_19 : f32 to vector<1x256xf32>
        %c0_20 = arith.constant 0 : index
        %c0_21 = arith.constant 0 : index
        %27 = vector.load %arg9[%c0_20, %c0_21] : memref<1x256xf32, #tpu.memory_space<vmem>>, vector<1x256xf32>
        tpu.vector_store %arg9[%c0_20, %c0_21], %26 {strides = array<i32>} : memref<1x256xf32, #tpu.memory_space<vmem>>, vector<1x256xf32>,
      } else {
      }
      %c0 = arith.constant 0 : index
      %c0_4 = arith.constant 0 : index
      %9 = vector.load %arg2[%c0, %c0_4] : memref<16x256xf32, #tpu.memory_space<vmem>>, vector<16x256xf32>
      %c0_5 = arith.constant 0 : index
      %c0_6 = arith.constant 0 : index
      %10 = vector.load %arg8[%c0_5, %c0_6] : memref<1x256xf32, #tpu.memory_space<vmem>>, vector<1x256xf32>
      %cst = arith.constant dense<0.000000e+00> : vector<256xf32>
      %11 = vector.multi_reduction <add>, %9, %cst [0] : vector<16x256xf32> to vector<256xf32>
      %12 = vector.shape_cast %11 : vector<256xf32> to vector<1x256xf32>
      %13 = arith.addf %10, %12 : vector<1x256xf32>
      %c0_7 = arith.constant 0 : index
      %c0_8 = arith.constant 0 : index
      %14 = vector.load %arg8[%c0_7, %c0_8] : memref<1x256xf32, #tpu.memory_space<vmem>>, vector<1x256xf32>
      tpu.vector_store %arg8[%c0_7, %c0_8], %13 {strides = array<i32>} : memref<1x256xf32, #tpu.memory_space<vmem>>, vector<1x256xf32>,
      %c0_9 = arith.constant 0 : index
      %c0_10 = arith.constant 0 : index
      %15 = vector.load %arg9[%c0_9, %c0_10] : memref<1x256xf32, #tpu.memory_space<vmem>>, vector<1x256xf32>
      %16 = arith.mulf %9, %9 : vector<16x256xf32>
      %cst_11 = arith.constant dense<0.000000e+00> : vector<256xf32>
      %17 = vector.multi_reduction <add>, %16, %cst_11 [0] : vector<16x256xf32> to vector<256xf32>
      %18 = vector.shape_cast %17 : vector<256xf32> to vector<1x256xf32>
      %19 = arith.addf %15, %18 : vector<1x256xf32>
      %c0_12 = arith.constant 0 : index
      %c0_13 = arith.constant 0 : index
      %20 = vector.load %arg9[%c0_12, %c0_13] : memref<1x256xf32, #tpu.memory_space<vmem>>, vector<1x256xf32>
      tpu.vector_store %arg9[%c0_12, %c0_13], %19 {strides = array<i32>} : memref<1x256xf32, #tpu.memory_space<vmem>>, vector<1x256xf32>,
      %c0_i32_14 = arith.constant 0 : i32
      %21 = arith.cmpi eq, %arg1, %c0_i32_14 : i32
      %22 = arith.extui %21 : i1 to i32
      %c0_i32_15 = arith.constant 0 : i32
      %23 = arith.cmpi ne, %22, %c0_i32_15 : i32
      scf.if %23 {
        %c0_16 = arith.constant 0 : index
        %c0_17 = arith.constant 0 : index
        %24 = vector.load %arg8[%c0_16, %c0_17] : memref<1x256xf32, #tpu.memory_space<vmem>>, vector<1x256xf32>
        %cst_18 = arith.constant 0.0833333358 : f32
        %25 = vector.broadcast %cst_18 : f32 to vector<1x256xf32>
        %26 = arith.mulf %24, %25 : vector<1x256xf32>
        %c0_19 = arith.constant 0 : index
        %c0_20 = arith.constant 0 : index
        %27 = vector.load %arg9[%c0_19, %c0_20] : memref<1x256xf32, #tpu.memory_space<vmem>>, vector<1x256xf32>
        %cst_21 = arith.constant 0.0833333358 : f32
        %28 = vector.broadcast %cst_21 : f32 to vector<1x256xf32>
        %29 = arith.mulf %27, %28 : vector<1x256xf32>
        %30 = arith.mulf %26, %26 : vector<1x256xf32>
        %31 = arith.subf %29, %30 : vector<1x256xf32>
        %cst_22 = arith.constant 0.000000e+00 : f32
        %32 = vector.broadcast %cst_22 : f32 to vector<1x256xf32>
        %33 = arith.maximumf %31, %32 : vector<1x256xf32>
        %c0_23 = arith.constant 0 : index
        %c0_24 = arith.constant 0 : index
        %34 = vector.load %arg3[%c0_23, %c0_24] : memref<1x256xf32, #tpu.memory_space<vmem>>, vector<1x256xf32>
        %cst_25 = arith.constant 9.99999974E-6 : f32
        %35 = vector.broadcast %cst_25 : f32 to vector<1x256xf32>
        %36 = arith.addf %33, %35 : vector<1x256xf32>
        %37 = math.rsqrt %36 : vector<1x256xf32>
        %38 = arith.mulf %34, %37 : vector<1x256xf32>
        %c0_26 = arith.constant 0 : index
        %c0_27 = arith.constant 0 : index
        %39 = vector.load %arg4[%c0_26, %c0_27] : memref<1x256xf32, #tpu.memory_space<vmem>>, vector<1x256xf32>
        %40 = arith.mulf %26, %38 : vector<1x256xf32>
        %41 = arith.subf %39, %40 : vector<1x256xf32>
        %c0_28 = arith.constant 0 : index
        %c0_29 = arith.constant 0 : index
        %42 = vector.load %arg5[%c0_28, %c0_29] : memref<256x128xf32, #tpu.memory_space<vmem>>, vector<256x128xf32>
        %43 = tpu.transpose %38, [1, 0] : vector<1x256xf32> -> vector<256x1xf32>
        %44 = vector.broadcast %43 : vector<256x1xf32> to vector<256x128xf32>
        %45 = arith.mulf %42, %44 : vector<256x128xf32>
        %c0_30 = arith.constant 0 : index
        %c0_31 = arith.constant 0 : index
        %46 = vector.load %arg10[%c0_30, %c0_31] : memref<256x128xf32, #tpu.memory_space<vmem>>, vector<256x128xf32>
        tpu.vector_store %arg10[%c0_30, %c0_31], %45 {strides = array<i32>} : memref<256x128xf32, #tpu.memory_space<vmem>>, vector<256x128xf32>,
        %c0_32 = arith.constant 0 : index
        %c0_33 = arith.constant 0 : index
        %47 = vector.load %arg5[%c0_32, %c0_33] : memref<256x128xf32, #tpu.memory_space<vmem>>, vector<256x128xf32>
        %cst_34 = arith.constant dense<0.000000e+00> : vector<1x128xf32>
        %48 = tpu.matmul %41, %47, %cst_34 {dimension_numbers = #tpu.dot_dimension_numbers<[1], [0], [0], [1], [0, 0, 1, 1], [], []>, precision = #tpu.contract_precision<fp32>} : vector<1x256xf32>, vector<256x128xf32>, vector<1x128xf32> -> vector<1x128xf32>
        %c0_35 = arith.constant 0 : index
        %c0_36 = arith.constant 0 : index
        %49 = vector.load %arg6[%c0_35, %c0_36] : memref<1x128xf32, #tpu.memory_space<vmem>>, vector<1x128xf32>
        %50 = arith.addf %48, %49 : vector<1x128xf32>
        %c0_37 = arith.constant 0 : index
        %c0_38 = arith.constant 0 : index
        %51 = vector.load %arg11[%c0_37, %c0_38] : memref<1x128xf32, #tpu.memory_space<vmem>>, vector<1x128xf32>
        tpu.vector_store %arg11[%c0_37, %c0_38], %50 {strides = array<i32>} : memref<1x128xf32, #tpu.memory_space<vmem>>, vector<1x128xf32>,
      } else {
      }
    } else {
    }
    %c1_i32 = arith.constant 1 : i32
    %3 = arith.cmpi eq, %arg0, %c1_i32 : i32
    %4 = arith.extui %3 : i1 to i32
    %c0_i32_1 = arith.constant 0 : i32
    %5 = arith.cmpi ne, %4, %c0_i32_1 : i32
    scf.if %5 {
      %c0 = arith.constant 0 : index
      %c0_2 = arith.constant 0 : index
      %6 = vector.load %arg2[%c0, %c0_2] : memref<16x256xf32, #tpu.memory_space<vmem>>, vector<16x256xf32>
      %c0_3 = arith.constant 0 : index
      %c0_4 = arith.constant 0 : index
      %7 = vector.load %arg10[%c0_3, %c0_4] : memref<256x128xf32, #tpu.memory_space<vmem>>, vector<256x128xf32>
      %cst = arith.constant dense<0.000000e+00> : vector<16x128xf32>
      %8 = tpu.matmul %6, %7, %cst {dimension_numbers = #tpu.dot_dimension_numbers<[1], [0], [0], [1], [0, 0, 1, 1], [], []>, precision = #tpu.contract_precision<fp32>} : vector<16x256xf32>, vector<256x128xf32>, vector<16x128xf32> -> vector<16x128xf32>
      %c0_5 = arith.constant 0 : index
      %c0_6 = arith.constant 0 : index
      %9 = vector.load %arg11[%c0_5, %c0_6] : memref<1x128xf32, #tpu.memory_space<vmem>>, vector<1x128xf32>
      %10 = vector.broadcast %9 : vector<1x128xf32> to vector<16x128xf32>
      %11 = arith.addf %8, %10 : vector<16x128xf32>
      %c0_7 = arith.constant 0 : index
      %c0_8 = arith.constant 0 : index
      %12 = vector.load %arg7[%c0_7, %c0_8] : memref<16x128xf32, #tpu.memory_space<vmem>>, vector<16x128xf32>
      tpu.vector_store %arg7[%c0_7, %c0_8], %11 {strides = array<i32>} : memref<16x128xf32, #tpu.memory_space<vmem>>, vector<16x128xf32>,
    } else {
    }
    return
  }
  func.func @transform_0(%arg0: i32, %arg1: i32) -> (i32, i32) {
    %c0_i32 = arith.constant 0 : i32
    %c0_i32_0 = arith.constant 0 : i32
    return %arg1, %c0_i32 : i32, i32
  }
  func.func @transform_1(%arg0: i32, %arg1: i32) -> (i32, i32) {
    %c0_i32 = arith.constant 0 : i32
    %c0_i32_0 = arith.constant 0 : i32
    %c0_i32_1 = arith.constant 0 : i32
    return %c0_i32, %c0_i32_0 : i32, i32
  }
  func.func @transform_2(%arg0: i32, %arg1: i32) -> (i32, i32) {
    %c0_i32 = arith.constant 0 : i32
    %c0_i32_0 = arith.constant 0 : i32
    %c0_i32_1 = arith.constant 0 : i32
    return %c0_i32, %c0_i32_0 : i32, i32
  }
  func.func @transform_3(%arg0: i32, %arg1: i32) -> (i32, i32) {
    %c0_i32 = arith.constant 0 : i32
    %c0_i32_0 = arith.constant 0 : i32
    %c0_i32_1 = arith.constant 0 : i32
    return %c0_i32, %c0_i32_0 : i32, i32
  }
  func.func @transform_4(%arg0: i32, %arg1: i32) -> (i32, i32) {
    %c0_i32 = arith.constant 0 : i32
    %c0_i32_0 = arith.constant 0 : i32
    %c0_i32_1 = arith.constant 0 : i32
    return %c0_i32, %c0_i32_0 : i32, i32
  }
  func.func @transform_5(%arg0: i32, %arg1: i32) -> (i32, i32) {
    %c0_i32 = arith.constant 0 : i32
    %c0_i32_0 = arith.constant 0 : i32
    return %arg1, %c0_i32 : i32, i32
  }
}

</mosaic_0001>

<bundles_post_ra>
// kernel: cluster_head_forward.1
= control target key start
LH: loop header
LB: loop body
LE: loop exit
PB: predicated region body
PF: predicated region fallthrough
CT: control target
= control target key end

     0   :  { %s3550_s18 = smov 0   ;;  %s3552_s19 = smov 0   ;;  %s4781_s0 = inlined_call_operand.vmem [shape: f32[16,256], index: 0, kind: input, shape index: {}]   ;;  %s4782_s1 = inlined_call_operand.vmem [shape: f32[1,256], index: 1, kind: input, shape index: {}]   ;;  %s4783_s2 = inlined_call_operand.vmem [shape: f32[1,256], index: 2, kind: input, shape index: {}]   ;;  %s4784_s3 = inlined_call_operand.vmem [shape: f32[256,128], index: 3, kind: input, shape index: {}]   ;;  %s4785_s4 = inlined_call_operand.vmem [shape: f32[1,128], index: 4, kind: input, shape index: {}]   ;;  %s4786_s5 = inlined_call_operand.vmem [shape: f32[16,128], index: 5, kind: output, shape index: {}]  }
   0x1   :  { %s3554_s20 = smov 0  }
   0x2 LB: > { %s27_s21 = sadd.s32 1, %s3511_s19  ;;  %p2629_p0 = scmp.ge.s32.totalorder %s3515_s20, 1  ;;  %s3515_s20 = sphi %s3554_s20, %s15_s20   ;;  %s3511_s19 = sphi %s3552_s19, %s5071_s19   ;;  %s3507_s18 = sphi %s3550_s18, %s5070_s18  }
   0x3   : > { %p29_p1 = scmp.ge.s32.totalorder %s27_s21, 2  ;;  %p201_p2 = scmp.lt.s32.totalorder %s3515_s20, 3 }
   0x5   : > { %s5073_s21 = smov (%p29_p1, %s27_s21), 0  ;;  %p202_p3 = pnand %p2629_p0, %p201_p2 }
   0x6   : > { %p2630_p4 = scmp.ne.s32.totalorder (!%p202_p3), %s3507_s18, 0 }
   0x7   : > { %205 = sbr.rel (%p202_p3) target bundleno = 877 (0x36d), region = 40 }
   0xe   : > { %246 = sbr.rel (%p2630_p4) target bundleno = 521 (0x209), region = 44 }
  0x15   : > { %v251_v0 = vlaneseq  ;;  %v257_v1 = vld [vmem:[%s4781_s0] sm:$0xff]  ;;  %v258_v2 = vld [vmem:[%s4781_s0 + $0x8] sm:$0xff]  ;;  %v259_v3 = vld [vmem:[%s4781_s0 + $0x10] sm:$0xff]  ;;  %v3517_v6 = vmov 1966171168   ;;  %v3518_v16 = vmov 0.0  }
  0x16   : > { %v260_v4 = vld [vmem:[%s4781_s0 + $0x18] sm:$0xff]  ;;  %v262_v5 = vadd.f32 %v259_v3, %v257_v1  ;;  %v280_v7 = vunpack.c.l.s4 %v3517_v6  ;;  %v301_v8 = vmul.f32 %v257_v1, %v257_v1  ;;  %v302_v9 = vmul.f32 %v258_v2, %v258_v2  ;;  %v703_v14 = vld [vmem:[%s4784_s3 + $0x80] sm:$0xff]  ;;  %v704_v15 = vld [vmem:[%s4784_s3 + $0x88] sm:$0xff] }
  0x17   : > { %vm3583_vm0 = vcmp.lt.s32.totalorder %v251_v0, 256  ;;  %v269_v11 = vadd.f32 %v260_v4, %v258_v2  ;;  %v3587_v12 = vshrl.u32 %v251_v0, 7  ;;  %v303_v13 = vmul.f32 %v259_v3, %v259_v3  ;;  %v3602_v21 = vld [vmem:[%s4784_s3] sm:$0xff]  ;;  %v688_v22 = vld [vmem:[%s4784_s3 + $0x8] sm:$0xff]  ;;  %v3640_v58 = vld [vmem:[%s4784_s3 + $0x90] sm:$0xff] }
  0x18   : > { %255 = vst.msk [vmem:[#allocation2] sm:$0x3] %vm3583_vm0, %v3518_v16  ;;  %256 = vst.msk [vmem:[#allocation3] sm:$0x3] %vm3583_vm0, %v3518_v16  ;;  %v263_v17 = vrot.slane %v262_v5, 4  ;;  %v281_v18 = vunpack.c.0.s8 %v280_v7  ;;  %v304_v19 = vmul.f32 %v260_v4, %v260_v4  ;;  %v780_v20 = vand.u32 4294901760, %v703_v14 }
  0x19   : > { %4907 = vst [vmem:[#allocation6_spill] sm:$0xff] %v3587_v12  ;;  %4908 = vst [vmem:[#allocation7_spill] sm:$0xff] %v3602_v21  ;;  %v270_v23 = vrot.slane %v269_v11, 4  ;;  %v305_v24 = vadd.f32 %v303_v13, %v301_v8  ;;  %v783_v29 = vand.u32 4294901760, %v704_v15  ;;  %v732_v32 = vand.u32 4294901760, %v3602_v21  ;;  %v3645_v59 = vld [vmem:[%s4784_s3 + $0x98] sm:$0xff] }
  0x1a   : > { %v264_v26 = vadd.f32 %v263_v17, %v262_v5  ;;  %v3609_v27 = vsub.s32 %v281_v18, %v3587_v12  ;;  %v312_v28 = vadd.f32 %v304_v19, %v302_v9  ;;  %v735_v33 = vand.u32 4294901760, %v688_v22  ;;  %4909 = vst [vmem:[#allocation8_spill] sm:$0xff] %v3640_v58  ;;  %4910 = vst [vmem:[#allocation9_spill] sm:$0xff] %v3645_v59  ;;  %v3653_v0 = vld [vmem:[%s4784_s3 + $0x10] sm:$0xff]  ;;  %v3663_v9 = vld [vmem:[%s4784_s3 + $0x18] sm:$0xff] }
  0x1b   : > { %v271_v30 = vadd.f32 %v270_v23, %v269_v11  ;;  %v306_v31 = vrot.slane %v305_v24, 4  ;;  %v3612_v36 = vpack.c.bf16 %v783_v29, %v780_v20  ;;  %v3614_v37 = vsub.f32 %v703_v14, %v780_v20  ;;  %4911 = vst [vmem:[#allocation10_spill] sm:$0xff] %v3653_v0  ;;  %4912 = vst [vmem:[#allocation11_spill] sm:$0xff] %v3663_v9  ;;  %v3669_v16 = vld [vmem:[%s4784_s3 + $0xa0] sm:$0xff]  ;;  %v3904_v25 = vld [vmem:[%s4784_s3 + $0x58] sm:$0xff] }
  0x1c   : > { %v265_v34 = vrot.slane %v264_v26, 2  ;;  %v313_v35 = vrot.slane %v312_v28, 4  ;;  %v3616_v40 = vpack.c.bf16 %v735_v33, %v732_v32  ;;  %v3619_v41 = vsub.f32 %v3602_v21, %v732_v32  ;;  %4913 = vst [vmem:[#allocation12_spill] sm:$0xff] %v3669_v16  ;;  %4928 = vst [vmem:[#allocation27_spill] sm:$0xff] %v3904_v25 }
  0x1d   : > { %v272_v38 = vrot.slane %v271_v30, 2  ;;  %v307_v39 = vadd.f32 %v306_v31, %v305_v24  ;;  %3076 = vmatprep.subr.bf16.mxu0 %v3612_v36  ;;  %v3622_v44 = vsub.f32 %v688_v22, %v735_v33  ;;  %v4802_v45 = vand.u32 4294901760, %v3614_v37 }
  0x1e   : > { %v266_v42 = vadd.f32 %v265_v34, %v264_v26  ;;  %v314_v43 = vadd.f32 %v313_v35, %v312_v28  ;;  %3078 = vmatpush3.bf16.msra.mxu0 %v3616_v40  ;;  %v3626_v48 = vsub.f32 %v704_v15, %v783_v29  ;;  %v4799_v49 = vand.u32 4294901760, %v3619_v41  ;;  %v3684_v28 = vld [vmem:[%s4784_s3 + $0xa8] sm:$0xff] }
  0x1f   : > { %v273_v46 = vadd.f32 %v272_v38, %v271_v30  ;;  %v308_v47 = vrot.slane %v307_v39, 2  ;;  %v959_v52 = vsub.f32 %v3614_v37, %v4802_v45  ;;  %v4797_v53 = vand.u32 4294901760, %v3622_v44  ;;  %4914 = vst [vmem:[#allocation13_spill] sm:$0xff] %v3684_v28  ;;  %v261_v29 = vld [vmem:[#allocation2] sm:$0x3] }
  0x20   : > { %v267_v50 = vrot.slane %v266_v42, 1  ;;  %v315_v51 = vrot.slane %v314_v43, 2  ;;  %v4801_v56 = vand.u32 4294901760, %v3626_v48  ;;  %v847_v57 = vsub.f32 %v3619_v41, %v4799_v49 }
  0x21   : > { %v274_v54 = vrot.slane %v273_v46, 1  ;;  %v309_v55 = vadd.f32 %v308_v47, %v307_v39  ;;  %v960_v62 = vand.u32 4294901760, %v959_v52  ;;  %v854_v63 = vsub.f32 %v3622_v44, %v4797_v53  ;;  %v300_v52 = vld [vmem:[#allocation3] sm:$0x3] }
  0x22   : > { %v268_v60 = vadd.f32 %v267_v50, %v266_v42  ;;  %v316_v61 = vadd.f32 %v315_v51, %v314_v43  ;;  %v966_v3 = vsub.f32 %v3626_v48, %v4801_v56  ;;  %v848_v4 = vand.u32 4294901760, %v847_v57  ;;  %v3708_v50 = vld [vmem:[%s4784_s3 + $0x20] sm:$0xff] }
  0x23   : > { %v275_v1 = vadd.f32 %v274_v54, %v273_v46  ;;  %v310_v2 = vrot.slane %v309_v55, 1  ;;  %v855_v6 = vand.u32 4294901760, %v854_v63  ;;  %v786_v7 = vand.u32 4294901760, %v3640_v58  ;;  %4915 = vst [vmem:[#allocation14_spill] sm:$0xff] %v3708_v50 }
  0x24   : > { %v317_v5 = vrot.slane %v316_v61, 1  ;;  %v789_v8 = vand.u32 4294901760, %v3645_v59  ;;  %v967_v14 = vand.u32 4294901760, %v966_v3  ;;  %v738_v15 = vand.u32 4294901760, %v3653_v0 }
  0x25   : > { %v278_v11 = vcombine.low %v268_v60, %v275_v1  ;;  %v311_v13 = vadd.f32 %v310_v2, %v309_v55  ;;  %v3109_v18 = vpack.c.bf16 %v855_v6, %v848_v4  ;;  %v3674_v20 = vsub.f32 %v3640_v58, %v786_v7  ;;  %v3721_v60 = vld [vmem:[%s4784_s3 + $0x28] sm:$0xff] }
  0x26   : > { %v318_v17 = vadd.f32 %v317_v5, %v316_v61  ;;  %v3671_v19 = vpack.c.bf16 %v789_v8, %v786_v7  ;;  %v3107_v23 = vpack.c.bf16 %v967_v14, %v960_v62  ;;  %v3678_v24 = vsub.f32 %v3645_v59, %v789_v8  ;;  %4916 = vst [vmem:[#allocation15_spill] sm:$0xff] %v3721_v60  ;;  %v3741_v5 = vld [vmem:[%s4784_s3 + $0xb0] sm:$0xff] }
  0x27   : > { %v285_v22 = vrot.slane %v278_v11, %v3609_v27  ;;  %v741_v26 = vand.u32 4294901760, %v3663_v9  ;;  %v3688_v31 = vsub.f32 %v3653_v0, %v738_v15  ;;  %v4796_v32 = vand.u32 4294901760, %v3674_v20  ;;  %4917 = vst [vmem:[#allocation16_spill] sm:$0xff] %v3741_v5 }
  0x28   : > { %v321_v30 = vcombine.low %v311_v13, %v318_v17  ;;  %3080 = vmatprep.subr.bf16.mxu0 %v3671_v19  ;;  %v792_v33 = vand.u32 4294901760, %v3669_v16  ;;  %3108 = vmatprep.subr.bf16.mxu1 %v3107_v23  ;;  %v4795_v39 = vand.u32 4294901760, %v3678_v24  ;;  %v795_v47 = vand.u32 4294901760, %v3684_v28  ;;  %v3749_v13 = vld [vmem:[%s4784_s3 + $0xb8] sm:$0xff] }
  0x29   : > { %v292_v34 = vrot.slane %v285_v22, %v3609_v27  ;;  %v3693_v35 = vpack.c.bf16 %v741_v26, %v738_v15  ;;  %v3696_v38 = vsub.f32 %v3663_v9, %v741_v26  ;;  %3110 = vmatpush3.bf16.msra.mxu1 %v3109_v18  ;;  %v973_v43 = vsub.f32 %v3674_v20, %v4796_v32  ;;  %v3758_v22 = vld [vmem:[%s4784_s3 + $0x30] sm:$0xff] }
  0x2a   : > { %v328_v42 = vrot.slane %v321_v30, %v3609_v27  ;;  %v4794_v46 = vand.u32 4294901760, %v3688_v31  ;;  %v980_v54 = vsub.f32 %v3678_v24, %v4795_v39  ;;  %v3716_v57 = vsub.f32 %v3669_v16, %v792_v33  ;;  %4918 = vst [vmem:[#allocation17_spill] sm:$0xff] %v3749_v13  ;;  %4919 = vst [vmem:[#allocation18_spill] sm:$0xff] %v3758_v22 }
  0x2b   : > { %v294_v51 = vadd.f32 %v292_v34, %v261_v29  ;;  %3082 = vmatpush3.bf16.msra.mxu0 %v3693_v35  ;;  %v4793_v55 = vand.u32 4294901760, %v3696_v38  ;;  %v974_v62 = vand.u32 4294901760, %v973_v43  ;;  %v3727_v1 = vpack.c.bf16 %v795_v47, %v792_v33  ;;  %v3779_v43 = vld [vmem:[%s4784_s3 + $0x38] sm:$0xff] }
  0x2c   : > { %v335_v61 = vrot.slane %v328_v42, %v3609_v27  ;;  %v861_v63 = vsub.f32 %v3688_v31, %v4794_v46  ;;  %v981_v2 = vand.u32 4294901760, %v980_v54  ;;  %v3735_v4 = vsub.f32 %v3684_v28, %v795_v47  ;;  %4920 = vst [vmem:[#allocation19_spill] sm:$0xff] %v3779_v43 }
  0x2d   : > { %299 = vst.msk [vmem:[#allocation2] sm:$0x3] %vm3583_vm0, %v294_v51  ;;  %v868_v3 = vsub.f32 %v3696_v38, %v4793_v55  ;;  %v744_v27 = vand.u32 4294901760, %v3708_v50  ;;  %3084 = vmatprep.subr.bf16.mxu0 %v3727_v1  ;;  %v747_v8 = vand.u32 4294901760, %v3721_v60  ;;  %v4791_v11 = vand.u32 4294901760, %v3716_v57 }
  0x2e   : > { %v337_v6 = vadd.f32 %v335_v61, %v300_v52  ;;  %v862_v7 = vand.u32 4294901760, %v861_v63  ;;  %v3111_v14 = vpack.c.bf16 %v981_v2, %v974_v62  ;;  %v4790_v18 = vand.u32 4294901760, %v3735_v4 }
  0x2f   : > { %v869_v15 = vand.u32 4294901760, %v868_v3  ;;  %v3752_v17 = vsub.f32 %v3708_v50, %v744_v27  ;;  %v3762_v23 = vpack.c.bf16 %v747_v8, %v744_v27  ;;  %v3765_v26 = vsub.f32 %v3721_v60, %v747_v8 }
  0x30   : > { %338 = vst.msk [vmem:[#allocation3] sm:$0x3] %vm3583_vm0, %v337_v6  ;;  %v987_v29 = vsub.f32 %v3716_v57, %v4791_v11  ;;  %v798_v30 = vand.u32 4294901760, %v3741_v5  ;;  %3112 = vmatprep.subr.bf16.mxu1 %v3111_v14  ;;  %v994_v34 = vsub.f32 %v3735_v4, %v4790_v18  ;;  %v801_v42 = vand.u32 4294901760, %v3749_v13  ;;  %v3806_v14 = vld [vmem:[%s4784_s3 + $0xc0] sm:$0xff] }
  0x31   : > { %v3113_v33 = vpack.c.bf16 %v869_v15, %v862_v7  ;;  %v4788_v10 = vand.u32 4294901760, %v3752_v17  ;;  %3086 = vmatpush3.bf16.msra.mxu0 %v3762_v23  ;;  %v4787_v51 = vand.u32 4294901760, %v3765_v26  ;;  %v750_v54 = vand.u32 4294901760, %v3758_v22  ;;  %4921 = vst [vmem:[#allocation20_spill] sm:$0xff] %v3806_v14 }
  0x32   : > { %v988_v47 = vand.u32 4294901760, %v987_v29  ;;  %v3784_v52 = vsub.f32 %v3741_v5, %v798_v30  ;;  %v995_v61 = vand.u32 4294901760, %v994_v34  ;;  %v3790_v63 = vpack.c.bf16 %v801_v42, %v798_v30 }
  0x33   : > { %3114 = vmatpush3.bf16.msra.mxu1 %v3113_v33  ;;  %v875_v62 = vsub.f32 %v3752_v17, %v4788_v10  ;;  %v3793_v2 = vsub.f32 %v3749_v13, %v801_v42  ;;  %v882_v27 = vsub.f32 %v3765_v26, %v4787_v51  ;;  %v753_v6 = vand.u32 4294901760, %v3779_v43  ;;  %v3939_v13 = vld [vmem:[%s4784_s3 + $0x60] sm:$0xff] }
  0x34   : > { %v342_v3 = vld [vmem:[#allocation2] sm:$0x3]  ;;  %v3800_v7 = vsub.f32 %v3758_v22, %v750_v54  ;;  %v4789_v8 = vand.u32 4294901760, %v3784_v52  ;;  %v3115_v29 = vpack.c.bf16 %v995_v61, %v988_v47  ;;  %3088 = vmatprep.subr.bf16.mxu0 %v3790_v63  ;;  %4933 = vst [vmem:[#allocation31_spill] sm:$0xff] %v3939_v13  ;;  %v768_v28 = vand.u32 4294901760, %v3939_v13 }
  0x35   : > { %v3808_v15 = vmul.f32 0.083333336, %v342_v3  ;;  %v876_v30 = vand.u32 4294901760, %v875_v62  ;;  %v4792_v33 = vand.u32 4294901760, %v3793_v2  ;;  %v883_v34 = vand.u32 4294901760, %v882_v27  ;;  %v3823_v3 = vld [vmem:[%s4784_s3 + $0xc8] sm:$0xff] }
  0x36   : > { %v3812_v42 = vpack.c.bf16 %v753_v6, %v750_v54  ;;  %v3815_v51 = vsub.f32 %v3779_v43, %v753_v6  ;;  %v1001_v10 = vsub.f32 %v3784_v52, %v4789_v8  ;;  %4922 = vst [vmem:[#allocation21_spill] sm:$0xff] %v3823_v3  ;;  %3116 = vmatprep.subr.bf16.mxu1 %v3115_v29  ;;  %v4798_v62 = vand.u32 4294901760, %v3800_v7  ;;  %v3835_v6 = vld [vmem:[%s4784_s3 + $0x40] sm:$0xff]  ;;  %v3840_v8 = vld [vmem:[%s4784_s3 + $0x48] sm:$0xff] }
  0x37   : > { %v344_v47 = vld [vmem:[#allocation3] sm:$0x3]  ;;  %v346_v61 = vmul.f32 %v3808_v15, %v3808_v15  ;;  %v1008_v54 = vsub.f32 %v3793_v2, %v4792_v33  ;;  %v804_v27 = vand.u32 4294901760, %v3806_v14  ;;  %4923 = vst [vmem:[#allocation22_spill] sm:$0xff] %v3835_v6  ;;  %4924 = vst [vmem:[#allocation23_spill] sm:$0xff] %v3840_v8  ;;  %v3117_v29 = vpack.c.bf16 %v883_v34, %v876_v30 }
  0x38   : > { %v345_v18 = vmul.f32 0.083333336, %v344_v47  ;;  %3090 = vmatpush3.bf16.msra.mxu0 %v3812_v42  ;;  %v1002_v11 = vand.u32 4294901760, %v1001_v10  ;;  %v4800_v33 = vand.u32 4294901760, %v3815_v51  ;;  %v889_v46 = vsub.f32 %v3800_v7, %v4798_v62  ;;  %v3859_v47 = vld [vmem:[%s4784_s3 + $0xd0] sm:$0xff] }
  0x39   : > { %v1009_v55 = vand.u32 4294901760, %v1008_v54  ;;  %v807_v39 = vand.u32 4294901760, %v3823_v3  ;;  %v3849_v32 = vsub.f32 %v3806_v14, %v804_v27  ;;  %3118 = vmatpush3.bf16.msra.mxu1 %v3117_v29  ;;  %v756_v10 = vand.u32 4294901760, %v3835_v6  ;;  %4925 = vst [vmem:[#allocation24_spill] sm:$0xff] %v3859_v47 }
  0x3a   : > { %v347_v53 = vsub.f32 %v345_v18, %v346_v61  ;;  %v896_v30 = vsub.f32 %v3815_v51, %v4800_v33  ;;  %v759_v34 = vand.u32 4294901760, %v3840_v8  ;;  %v890_v62 = vand.u32 4294901760, %v889_v46  ;;  %v3869_v61 = vld [vmem:[%s4784_s3 + $0xd8] sm:$0xff] }
  0x3b   : > { %v3119_v54 = vpack.c.bf16 %v1009_v55, %v1002_v11  ;;  %v3861_v49 = vpack.c.bf16 %v807_v39, %v804_v27  ;;  %v3864_v18 = vsub.f32 %v3823_v3, %v807_v39  ;;  %4926 = vst [vmem:[#allocation25_spill] sm:$0xff] %v3869_v61  ;;  %v3874_v45 = vsub.f32 %v3835_v6, %v756_v10 }
  0x3c   : > { %v348_v29 = vmax.f32 %v347_v53, 0.0  ;;  %v897_v33 = vand.u32 4294901760, %v896_v30  ;;  %v3871_v56 = vpack.c.bf16 %v759_v34, %v756_v10  ;;  %v3878_v46 = vsub.f32 %v3840_v8, %v759_v34 }
  0x3d   : > { %3120 = vmatprep.subr.bf16.mxu1 %v3119_v54  ;;  %3092 = vmatprep.subr.bf16.mxu0 %v3861_v49  ;;  %v4803_v39 = vand.u32 4294901760, %v3849_v32  ;;  %v4805_v55 = vand.u32 4294901760, %v3864_v18  ;;  %v810_v11 = vand.u32 4294901760, %v3859_v47  ;;  %v4810_v30 = vand.u32 4294901760, %v3874_v45  ;;  %v3889_v54 = vld [vmem:[%s4784_s3 + $0x50] sm:$0xff] }
  0x3e   : > { %v350_v27 = vadd.f32 1e-05, %v348_v29  ;;  %v3121_v53 = vpack.c.bf16 %v897_v33, %v890_v62  ;;  %3094 = vmatpush3.bf16.msra.mxu0 %v3871_v56  ;;  %v813_v10 = vand.u32 4294901760, %v3869_v61  ;;  %4927 = vst [vmem:[#allocation26_spill] sm:$0xff] %v3889_v54  ;;  %v3917_v33 = vld [vmem:[%s4784_s3 + $0xe0] sm:$0xff]  ;;  %v4931_v14 = vand.u32 4294901760, %v3878_v46 }
  0x3f   : > { %v1015_v34 = vsub.f32 %v3849_v32, %v4803_v39  ;;  %v1022_v29 = vsub.f32 %v3864_v18, %v4805_v55  ;;  %v3899_v62 = vsub.f32 %v3859_v47, %v810_v11  ;;  %v903_v39 = vsub.f32 %v3874_v45, %v4810_v30  ;;  %4930 = vst [vmem:[#allocation29_spill] sm:$0xff] %v3917_v33 }
  0x40   : > { %3488 = vrsqrt.f32 %v350_v27  ;;  %3122 = vmatpush3.bf16.msra.mxu1 %v3121_v53  ;;  %v3909_v3 = vpack.c.bf16 %v813_v10, %v810_v11  ;;  %v3912_v55 = vsub.f32 %v3869_v61, %v813_v10  ;;  %v910_v27 = vsub.f32 %v3878_v46, %v4931_v14 }
  0x41   : > { %v1016_v47 = vand.u32 4294901760, %v1015_v34  ;;  %v1023_v8 = vand.u32 4294901760, %v1022_v29  ;;  %v762_v53 = vand.u32 4294901760, %v3889_v54  ;;  %v904_v6 = vand.u32 4294901760, %v903_v39  ;;  %v3930_v34 = vld [vmem:[%s4784_s3 + $0xe8] sm:$0xff] }
  0x42   : > { %4929 = vst [vmem:[#allocation28_spill] sm:$0xff] %v3909_v3  ;;  %3096 = vmatprep.subr.bf16.mxu0 %v3909_v3  ;;  %v765_v11 = vand.u32 4294901760, %v3904_v25  ;;  %4932 = vst [vmem:[#allocation30_spill] sm:$0xff] %v3930_v34  ;;  %v911_v61 = vand.u32 4294901760, %v910_v27  ;;  %v816_v39 = vand.u32 4294901760, %v3917_v33  ;;  %v4935_v43 = vand.u32 4294901760, %v3899_v62 }
  0x43   : > { %v3123_v29 = vpack.c.bf16 %v1023_v8, %v1016_v47  ;;  %v3933_v14 = vsub.f32 %v3889_v54, %v762_v53  ;;  %v4936_v47 = vand.u32 4294901760, %v3912_v55  ;;  %v3955_v54 = vld [vmem:[%s4784_s3 + $0x68] sm:$0xff] }
  0x44   : > { %v3941_v10 = vpack.c.bf16 %v765_v11, %v762_v53  ;;  %v3944_v30 = vsub.f32 %v3904_v25, %v765_v11  ;;  %v1029_v8 = vsub.f32 %v3899_v62, %v4935_v43  ;;  %4937 = vst [vmem:[#allocation33_spill] sm:$0xff] %v3955_v54  ;;  %v3125_v5 = vpack.c.bf16 %v911_v61, %v904_v6 }
  0x45   : > { %v1036_v27 = vsub.f32 %v3912_v55, %v4936_v47  ;;  %3124 = vmatprep.subr.bf16.mxu1 %v3123_v29  ;;  %v4820_v53 = vand.u32 4294901760, %v3933_v14  ;;  %v819_v11 = vand.u32 4294901760, %v3930_v34  ;;  %v3960_v25 = vsub.f32 %v3917_v33, %v816_v39 }
  0x46   : > { %4934 = vst [vmem:[#allocation32_spill] sm:$0xff] %v3941_v10  ;;  %3098 = vmatpush3.bf16.msra.mxu0 %v3941_v10  ;;  %v1030_v43 = vand.u32 4294901760, %v1029_v8  ;;  %v4824_v47 = vand.u32 4294901760, %v3944_v30  ;;  %3126 = vmatpush3.bf16.msra.mxu1 %v3125_v5  ;;  %v771_v33 = vand.u32 4294901760, %v3955_v54  ;;  %v3977_v8 = vld [vmem:[%s4784_s3 + $0xf0] sm:$0xff] }
  0x47   : > { %v1037_v22 = vand.u32 4294901760, %v1036_v27  ;;  %v917_v6 = vsub.f32 %v3933_v14, %v4820_v53  ;;  %v3968_v61 = vpack.c.bf16 %v819_v11, %v816_v39  ;;  %v3971_v29 = vsub.f32 %v3930_v34, %v819_v11  ;;  %4939 = vst [vmem:[#allocation35_spill] sm:$0xff] %v3977_v8  ;;  %v349_v5 = vld [vmem:[%s4782_s1] sm:$0x3]  ;;  %v3992_v34 = vld [vmem:[%s4784_s3 + $0xf8] sm:$0xff] }
  0x48   : > { %v924_v39 = vsub.f32 %v3944_v30, %v4824_v47  ;;  %v3986_v53 = vsub.f32 %v3939_v13, %v768_v28  ;;  %v4829_v11 = vand.u32 4294901760, %v3960_v25  ;;  %4940 = vst [vmem:[#allocation36_spill] sm:$0xff] %v3992_v34  ;;  %v3995_v16 = vpack.c.bf16 %v771_v33, %v768_v28 }
  0x49   : > { %4938 = vst [vmem:[#allocation34_spill] sm:$0xff] %v3968_v61  ;;  %v3127_v27 = vpack.c.bf16 %v1037_v22, %v1030_v43  ;;  %v918_v60 = vand.u32 4294901760, %v917_v6  ;;  %3100 = vmatprep.subr.bf16.mxu0 %v3968_v61  ;;  %v3998_v22 = vsub.f32 %v3955_v54, %v771_v33  ;;  %v4831_v43 = vand.u32 4294901760, %v3971_v29  ;;  %v4031_v33 = vld [vmem:[%s4784_s3 + $0x78] sm:$0xff] }
  0x4a   : > { %4941 = vst [vmem:[#allocation37_spill] sm:$0xff] %v3995_v16  ;;  %v3489_v47 = vpop.eup %3488  ;;  %v925_v13 = vand.u32 4294901760, %v924_v39  ;;  %v1043_v50 = vsub.f32 %v3960_v25, %v4829_v11  ;;  %v822_v6 = vand.u32 4294901760, %v3977_v8  ;;  %3102 = vmatpush3.bf16.msra.mxu0 %v3995_v16  ;;  %v353_v39 = vld [vmem:[%s4783_s2] sm:$0x3]  ;;  %v4943_v54 = vand.u32 4294901760, %v3986_v53 }
  0x4b   : > { %3128 = vmatprep.subr.bf16.mxu1 %v3127_v27  ;;  %v4006_v9 = vmul.f32 %v3489_v47, %v349_v5  ;;  %v1050_v28 = vsub.f32 %v3971_v29, %v4831_v43  ;;  %v825_v27 = vand.u32 4294901760, %v3992_v34  ;;  %v4026_v43 = vld [vmem:[%s4784_s3 + $0x70] sm:$0xff]  ;;  %4945 = vst [vmem:[#allocation40_spill] sm:$0xff] %v4031_v33  ;;  %v4947_v0 = vand.u32 4294901760, %v3998_v22 }
  0x4c   : > { %v3129_v11 = vpack.c.bf16 %v925_v13, %v918_v60  ;;  %v1044_v59 = vand.u32 4294901760, %v1043_v50  ;;  %v931_v47 = vsub.f32 %v3986_v53, %v4943_v54  ;;  %v4021_v5 = vsub.f32 %v3977_v8, %v822_v6  ;;  %4944 = vst [vmem:[#allocation39_spill] sm:$0xff] %v4026_v43 }
  0x4d   : > { %4942 = vst [vmem:[#allocation38_spill] sm:$0xff] %v4006_v9  ;;  %v4946_v60 = vsub.s32 0, %v3587_v12  ;;  %v354_v13 = vmul.f32 %v4006_v9, %v3808_v15  ;;  %v1051_v8 = vand.u32 4294901760, %v1050_v28  ;;  %v938_v21 = vsub.f32 %v3998_v22, %v4947_v0 }
  0x4e   : > { %3130 = vmatpush3.bf16.msra.mxu1 %v3129_v11  ;;  %v932_v58 = vand.u32 4294901760, %v931_v47  ;;  %v4042_v16 = vpack.c.bf16 %v825_v27, %v822_v6  ;;  %v4045_v61 = vsub.f32 %v3992_v34, %v825_v27  ;;  %v774_v3 = vand.u32 4294901760, %v4026_v43 }
  0x4f   : > { %v392_v50 = vrot.slane %v4006_v9, %v4946_v60  ;;  %v355_v10 = vsub.f32 %v353_v39, %v354_v13  ;;  %v3131_v60 = vpack.c.bf16 %v1051_v8, %v1044_v59  ;;  %v777_v15 = vand.u32 4294901760, %v4031_v33 }
  0x50   : > { %v939_v54 = vand.u32 4294901760, %v938_v21  ;;  %3104 = vmatprep.subr.bf16.mxu0 %v4042_v16  ;;  %v4846_v11 = vand.u32 4294901760, %v4021_v5  ;;  %v4845_v28 = vand.u32 4294901760, %v4045_v61  ;;  %v3139_v0 = vpack.c.bf16 %v3626_v48, %v3614_v37 }
  0x51   : > { %399 = vxpose.xlu0.b32.start.end [1/1] (short) %v392_v50, 128  ;;  %v4948_v6 = vsub.s32 0, %v3587_v12  ;;  %v4949_v39 = vsub.s32 1, %v3587_v12  ;;  %3132 = vmatprep.subr.bf16.mxu1 %v3131_v60  ;;  %v4058_v8 = vpack.c.bf16 %v777_v15, %v774_v3  ;;  %v4061_v21 = vsub.f32 %v4026_v43, %v774_v3 }
  0x52   : > { %v3133_v47 = vpack.c.bf16 %v939_v54, %v932_v58  ;;  %v4064_v50 = vsub.f32 %v4031_v33, %v777_v15  ;;  %v1057_v13 = vsub.f32 %v4021_v5, %v4846_v11 }
  0x53   : > { %v724_v27 = vrot.slane %v355_v10, %v4948_v6  ;;  %v728_v59 = vrot.slane %v355_v10, %v4949_v39  ;;  %v1064_v6 = vsub.f32 %v4045_v61, %v4845_v28  ;;  %3106 = vmatpush3.bf16.msra.mxu0 %v4058_v8  ;;  %v4848_v3 = vand.u32 4294901760, %v4061_v21 }
  0x54   : > { %3134 = vmatpush3.bf16.msra.mxu1 %v3133_v47  ;;  %v1058_v58 = vand.u32 4294901760, %v1057_v13  ;;  %v4851_v60 = vand.u32 4294901760, %v4064_v50  ;;  %3140 = vmatprep.subr.bf16.mxu0 %v3139_v0 }
  0x55   : > { %v4072_v34 = vand.u32 4294901760, %v724_v27  ;;  %v4074_v10 = vand.u32 4294901760, %v728_v59  ;;  %v1065_v54 = vand.u32 4294901760, %v1064_v6  ;;  %v945_v39 = vsub.f32 %v4061_v21, %v4848_v3 }
  0x56   : > { %v952_v47 = vsub.f32 %v4064_v50, %v4851_v60 }
  0x57   : > { %v4080_v15 = vsub.f32 %v724_v27, %v4072_v34  ;;  %v828_v28 = vsub.f32 %v728_v59, %v4074_v10  ;;  %1068 = vmatprep.mubr.f32.mxu1 %v4074_v10  ;;  %v3135_v11 = vpack.c.bf16 %v1065_v54, %v1058_v58  ;;  %v946_v13 = vand.u32 4294901760, %v945_v39 }
  0x58   : > { %v953_v27 = vand.u32 4294901760, %v952_v47  ;;  %v3141_v58 = vpack.c.bf16 %v3622_v44, %v3619_v41  ;;  %v3143_v54 = vpack.c.bf16 %v3678_v24, %v3674_v20  ;;  %v4854_v39 = vmov 0  }
  0x59   : > { %v829_v6 = vand.u32 4294901760, %v828_v28  ;;  %v4852_v0 = vand.u32 4294901760, %v4080_v15  ;;  %3136 = vmatprep.subr.bf16.mxu1 %v3135_v11  ;;  %3486 = vset.pattern.permute.xlu1 %v4854_v39  ;;  %v4950_v11 = vand.u32 4294901760, %v3614_v37  ;;  %v4951_v47 = vand.u32 4294901760, %v3626_v48 }
  0x5a   : > { %v3137_v43 = vpack.c.bf16 %v953_v27, %v946_v13  ;;  %v4952_v13 = vand.u32 4294901760, %v3619_v41  ;;  %v4954_v27 = vand.u32 4294901760, %v3674_v20  ;;  %v4957_v37 = vand.u32 4294901760, %v3696_v38 }
  0x5b   : > { %v830_v33 = vsub.f32 %v828_v28, %v829_v6  ;;  %v836_v3 = vsub.f32 %v4080_v15, %v4852_v0  ;;  %v4103_v60 = vpack.c.bf16 %v4951_v47, %v4950_v11  ;;  %v4955_v0 = vand.u32 4294901760, %v3678_v24 }
  0x5c   : > { %3138 = vmatpush3.bf16.msra.mxu1 %v3137_v43  ;;  %v4956_v43 = vand.u32 4294901760, %v3688_v31  ;;  %v4958_v41 = vand.u32 4294901760, %v3716_v57  ;;  %v4960_v20 = vand.u32 4294901760, %v3752_v17  ;;  %v4961_v24 = vand.u32 4294901760, %v3765_v26 }
  0x5d   : > { %v831_v59 = vand.u32 4294901760, %v830_v33  ;;  %v837_v9 = vand.u32 4294901760, %v836_v3  ;;  %v4953_v33 = vand.u32 4294901760, %v3622_v44  ;;  %v4115_v12 = vpack.c.bf16 %v4955_v0, %v4954_v27  ;;  %3172 = vmatprep.subr.bf16.mxu1 %v3612_v36 }
  0x5e   : > { %v4121_v39 = vpack.c.bf16 %v4957_v37, %v4956_v43  ;;  %v4959_v44 = vand.u32 4294901760, %v3735_v4  ;;  %v4134_v0 = vpack.c.bf16 %v4961_v24, %v4960_v20  ;;  %v4962_v11 = vand.u32 4294901760, %v3784_v52 }
  0x5f   : > { %v4109_v3 = vpack.c.bf16 %v4953_v33, %v4952_v13  ;;  %832 = vmatprep.mubr.f32.mxu0 %v831_v59  ;;  %v4963_v47 = vand.u32 4294901760, %v3793_v2  ;;  %v4964_v59 = vand.u32 4294901760, %v3800_v7  ;;  %v4965_v33 = vand.u32 4294901760, %v3815_v51  ;;  %1070 = vmatmul.mubr.f32.vlgmr.msra.gmra.mrb[0].mxu1 %v4072_v34 }
  0x60   : > { %v4128_v48 = vpack.c.bf16 %v4959_v44, %v4958_v41  ;;  %838 = vmatmul.mubr.f32.vlgmr.msra.gmra.mrb[0].mxu0 %v837_v9  ;;  %v3145_v43 = vpack.c.bf16 %v3696_v38, %v3688_v31  ;;  %3174 = vmatpush3.bf16.msra.mxu1 %v3616_v40  ;;  %v3147_v37 = vpack.c.bf16 %v3735_v4, %v3716_v57  ;;  %v4966_v9 = vand.u32 4294901760, %v3849_v32 }
  0x61   : > { %v4140_v13 = vpack.c.bf16 %v4963_v47, %v4962_v11  ;;  %v4146_v27 = vpack.c.bf16 %v4965_v33, %v4964_v59  ;;  %3142 = vmatpush3.bf16.msra.mxu0 %v3141_v58  ;;  %3176 = vmatprep.subr.bf16.mxu1 %v3671_v19  ;;  %v4967_v41 = vand.u32 4294901760, %v3864_v18  ;;  %v4968_v58 = vand.u32 4294901760, %v3874_v45 }
  0x62   : > { %3144 = vmatprep.subr.bf16.mxu0 %v3143_v54  ;;  %1205 = vmatprep.mubr.f32.mxu0 %v828_v28  ;;  %v4969_v31 = vand.u32 4294901760, %v3878_v46  ;;  %v3149_v57 = vpack.c.bf16 %v3765_v26, %v3752_v17  ;;  %v3151_v4 = vpack.c.bf16 %v3793_v2, %v3784_v52  ;;  %v4970_v28 = vand.u32 4294901760, %v3899_v62 }
  0x63   : > { %v4159_v44 = vpack.c.bf16 %v4967_v41, %v4966_v9  ;;  %1312 = vmatprep.mubr.f32.mxu1 %v829_v6  ;;  %v4971_v6 = vand.u32 4294901760, %v3912_v55  ;;  %v4972_v20 = vand.u32 4294901760, %v3933_v14  ;;  %v4973_v24 = vand.u32 4294901760, %v3944_v30 }
  0x64   : > { %v4165_v38 = vpack.c.bf16 %v4969_v31, %v4968_v58  ;;  %3178 = vmatpush3.bf16.msra.mxu1 %v3693_v35  ;;  %v3153_v17 = vpack.c.bf16 %v3815_v51, %v3800_v7  ;;  %v3155_v26 = vpack.c.bf16 %v3864_v18, %v3849_v32  ;;  %v4974_v52 = vand.u32 4294901760, %v3960_v25  ;;  %v4983_v31 = vld [vmem:[#allocation32_spill] sm:$0xff] }
  0x65   : > { %3146 = vmatpush3.bf16.msra.mxu0 %v3145_v43  ;;  %3180 = vmatprep.subr.bf16.mxu1 %v3727_v1  ;;  %v3223_v54 = vpack.c.bf16 %v4971_v6, %v4970_v28  ;;  %v4181_v11 = vpack.c.bf16 %v4973_v24, %v4972_v20  ;;  %v4975_v2 = vand.u32 4294901760, %v3971_v29  ;;  %v4976_v59 = vand.u32 4294901760, %v3986_v53  ;;  %v719_v6 = vld [vmem:[%s4785_s4] sm:$0x1] }
  0x66   : > { %3148 = vmatprep.subr.bf16.mxu0 %v3147_v37  ;;  %v4977_v33 = vand.u32 4294901760, %v3998_v22  ;;  %v3157_v51 = vpack.c.bf16 %v3878_v46, %v3874_v45  ;;  %v3159_v32 = vpack.c.bf16 %v3912_v55, %v3899_v62  ;;  %v4978_v7 = vand.u32 4294901760, %v4021_v5  ;;  %v4982_v55 = vld [vmem:[#allocation28_spill] sm:$0xff] }
  0x67   : > { %v3227_v47 = vpack.c.bf16 %v4975_v2, %v4974_v52  ;;  %v4979_v18 = vand.u32 4294901760, %v4045_v61  ;;  %v4980_v9 = vand.u32 4294901760, %v4061_v21  ;;  %v4981_v41 = vand.u32 4294901760, %v4064_v50  ;;  %v4991_v52 = vld [vmem:[#allocation7_spill] sm:$0xff] }
  0x68   : > { %3182 = vmatpush3.bf16.msra.mxu1 %v3762_v23  ;;  %v3229_v43 = vpack.c.bf16 %v4977_v33, %v4976_v59  ;;  %v3161_v45 = vpack.c.bf16 %v3944_v30, %v3933_v14  ;;  %v3163_v46 = vpack.c.bf16 %v3971_v29, %v3960_v25  ;;  %v3165_v62 = vpack.c.bf16 %v3998_v22, %v3986_v53  ;;  %v4985_v14 = vld [vmem:[#allocation37_spill] sm:$0xff]  ;;  %v4989_v53 = vld [vmem:[#allocation38_spill] sm:$0xff] }
  0x69   : > { %3150 = vmatpush3.bf16.msra.mxu0 %v3149_v57  ;;  %3184 = vmatprep.subr.bf16.mxu1 %v3790_v63  ;;  %v3231_v37 = vpack.c.bf16 %v4979_v18, %v4978_v7  ;;  %v3233_v58 = vpack.c.bf16 %v4981_v41, %v4980_v9  ;;  %v3167_v57 = vpack.c.bf16 %v4045_v61, %v4021_v5  ;;  %v4986_v25 = vand.u32 4294901760, %v4080_v15 }
  0x6a   : > { %3152 = vmatprep.subr.bf16.mxu0 %v3151_v4  ;;  %v4984_v4 = vld [vmem:[#allocation34_spill] sm:$0xff]  ;;  %v3169_v30 = vpack.c.bf16 %v4064_v50, %v4061_v21 }
  0x6c   : > { %3186 = vmatpush3.bf16.msra.mxu1 %v3812_v42 }
  0x6d   : > { %3154 = vmatpush3.bf16.msra.mxu0 %v3153_v17  ;;  %3188 = vmatprep.subr.bf16.mxu1 %v3861_v49 }
  0x6e   : > { %3156 = vmatprep.subr.bf16.mxu0 %v3155_v26 }
  0x70   : > { %3190 = vmatpush3.bf16.msra.mxu1 %v3871_v56 }
  0x71   : > { %3158 = vmatpush3.bf16.msra.mxu0 %v3157_v51  ;;  %3192 = vmatprep.subr.bf16.mxu1 %v4982_v55 }
  0x72   : > { %3160 = vmatprep.subr.bf16.mxu0 %v3159_v32 }
  0x74   : > { %3194 = vmatpush3.bf16.msra.mxu1 %v4983_v31 }
  0x75   : > { %3162 = vmatpush3.bf16.msra.mxu0 %v3161_v45  ;;  %3196 = vmatprep.subr.bf16.mxu1 %v4984_v4 }
  0x76   : > { %3164 = vmatprep.subr.bf16.mxu0 %v3163_v46 }
  0x78   : > { %3198 = vmatpush3.bf16.msra.mxu1 %v4985_v14 }
  0x79   : > { %3166 = vmatpush3.bf16.msra.mxu0 %v3165_v62  ;;  %3200 = vmatprep.subr.bf16.mxu1 %v4042_v16 }
  0x7a   : > { %3168 = vmatprep.subr.bf16.mxu0 %v3167_v57 }
  0x7c   : > { %3202 = vmatpush3.bf16.msra.mxu1 %v4058_v8 }
  0x7d   : > { %3170 = vmatpush3.bf16.msra.mxu0 %v3169_v30  ;;  %3236 = vmatprep.subr.bf16.mxu1 %v3612_v36  ;;  %v4987_v36 = vld [vmem:[#allocation6_spill] sm:$0xff] }
  0x7e   : > { %3204 = vmatprep.subr.bf16.mxu0 %v4103_v60 }
  0x7f   : > { %1316 = vmatmul.mubr.f32.vlgmr.msra.gmra.mrb[2].mxu1 %v4986_v25 }
  0x80   : > { %1208 = vmatmul.mubr.f32.vlgmr.msra.gmra.mrb[2].mxu0 %v4080_v15  ;;  %3238 = vmatpush3.bf16.msra.mxu1 %v3616_v40  ;;  %v4988_v40 = vsub.s32 1, %v4987_v36 }
  0x81   : > { %3206 = vmatpush3.bf16.msra.mxu0 %v4109_v3  ;;  %3240 = vmatprep.subr.bf16.mxu1 %v3671_v19 }
  0x82   : > { %3208 = vmatprep.subr.bf16.mxu0 %v4115_v12  ;;  %1482 = vmatprep.mubr.f32.mxu0 %v4074_v10  ;;  %v396_v12 = vrot.slane %v4989_v53, %v4988_v40  ;;  %v3490_v53 = vld [vmem:[%s4784_s3 + $0x80] sm:$0xff] }
  0x83   : > { %1586 = vmatprep.mubr.f32.mxu1 %v4074_v10 }
  0x84   : > { %3242 = vmatpush3.bf16.msra.mxu1 %v3693_v35 }
  0x85   : > { %3210 = vmatpush3.bf16.msra.mxu0 %v4121_v39  ;;  %3244 = vmatprep.subr.bf16.mxu1 %v3727_v1 }
  0x86   : > { %3212 = vmatprep.subr.bf16.mxu0 %v4128_v48 }
  0x88   : > { %3246 = vmatpush3.bf16.msra.mxu1 %v3762_v23 }
  0x89   : > { %3214 = vmatpush3.bf16.msra.mxu0 %v4134_v0  ;;  %3248 = vmatprep.subr.bf16.mxu1 %v3790_v63 }
  0x8a   : > { %3216 = vmatprep.subr.bf16.mxu0 %v4140_v13 }
  0x8c   : > { %3250 = vmatpush3.bf16.msra.mxu1 %v3812_v42 }
  0x8d   : > { %3218 = vmatpush3.bf16.msra.mxu0 %v4146_v27  ;;  %3252 = vmatprep.subr.bf16.mxu1 %v3861_v49  ;;  %v4990_v49 = vmov 0  }
  0x8e   : > { %431 = vxpose.xlu0.b32.start.end [1/1] (short) %v396_v12, 128  ;;  %3220 = vmatprep.subr.bf16.mxu0 %v4159_v44 }
  0x90   : > { %3254 = vmatpush3.bf16.msra.mxu1 %v3871_v56 }
  0x91   : > { %3222 = vmatpush3.bf16.msra.mxu0 %v4165_v38  ;;  %3256 = vmatprep.subr.bf16.mxu1 %v4982_v55 }
  0x92   : > { %3224 = vmatprep.subr.bf16.mxu0 %v3223_v54 }
  0x94   : > { %3258 = vmatpush3.bf16.msra.mxu1 %v4983_v31 }
  0x95   : > { %3226 = vmatpush3.bf16.msra.mxu0 %v4181_v11  ;;  %3260 = vmatprep.subr.bf16.mxu1 %v4984_v4 }
  0x96   : > { %3228 = vmatprep.subr.bf16.mxu0 %v3227_v47 }
  0x98   : > { %3262 = vmatpush3.bf16.msra.mxu1 %v4985_v14 }
  0x99   : > { %3230 = vmatpush3.bf16.msra.mxu0 %v3229_v43  ;;  %3264 = vmatprep.subr.bf16.mxu1 %v4042_v16 }
  0x9a   : > { %3232 = vmatprep.subr.bf16.mxu0 %v3231_v37 }
  0x9c   : > { %3266 = vmatpush3.bf16.msra.mxu1 %v4058_v8 }
  0x9d   : > { %3234 = vmatpush3.bf16.msra.mxu0 %v3233_v58 }
  0x9f   : > { %1588 = vmatmul.mubr.f32.vlgmr.msra.gmra.mrb[4].mxu1 %v4072_v34 }
  0xa0   : > { %1484 = vmatmul.mubr.f32.vlgmr.msra.gmra.mrb[4].mxu0 %v4072_v34 }
  0xb7   : > { %3487 = vset.pattern.permute.xlu0 %v4990_v49 }
  0xd1   : > { %v415_v56 = vpop.trf.xlu0 }
  0xd2   : > { %465 = vperm.xlu1 %3486, %v415_v56  }
  0xd5   : > { %v416_v19 = vpop.trf.xlu0 }
  0xd9   : > { %v417_v35 = vpop.trf.xlu0 }
  0xdd   : > { %v418_v1 = vpop.trf.xlu0 }
  0xe1   : > { %v419_v23 = vpop.trf.xlu0 }
  0xe5   : > { %v420_v63 = vpop.trf.xlu0 }
  0xe9   : > { %v421_v42 = vpop.trf.xlu0 }
  0xed   : > { %v422_v61 = vpop.trf.xlu0 }
  0xf1   : > { %v423_v29 = vpop.trf.xlu0 }
  0xf5   : > { %v424_v16 = vpop.trf.xlu0 }
  0xf9   : > { %v425_v22 = vpop.trf.xlu0 }
  0xfd   : > { %v426_v5 = vpop.trf.xlu0 }
 0x101   : > { %v427_v8 = vpop.trf.xlu0 }
 0x105   : > { %v428_v21 = vpop.trf.xlu0 }
 0x109   : > { %v4266_v50 = vpop.trf.xlu0 }
 0x10d   : > { %v4268_v34 = vpop.trf.xlu0 }
 0x111   : > { %v447_v10 = vpop.trf.xlu0 }
 0x112   : > { %545 = vperm.xlu1 %3486, %v447_v10  }
 0x115   : > { %v448_v60 = vpop.trf.xlu0 }
 0x116   : > { %470 = vperm.xlu1 %3486, %v416_v19   ;;  %550 = vperm.xlu0 %3487, %v448_v60   ;;  %v3491_v19 = vld [vmem:[%s4784_s3 + $0x8] sm:$0xff] }
 0x119   : > { %v449_v15 = vpop.trf.xlu0 }
 0x11a   : > { %475 = vperm.xlu1 %3486, %v417_v35  }
 0x11d   : > { %v450_v39 = vpop.trf.xlu0 }
 0x11e   : > { %555 = vperm.xlu1 %3486, %v449_v15   ;;  %v4996_v15 = vld [vmem:[#allocation14_spill] sm:$0xff] }
 0x121   : > { %v451_v3 = vpop.trf.xlu0 }
 0x122   : > { %480 = vperm.xlu1 %3486, %v418_v1   ;;  %v3492_v1 = vld [vmem:[%s4784_s3 + $0x88] sm:$0xff] }
 0x125   : > { %v452_v48 = vpop.trf.xlu0 }
 0x126   : > { %560 = vperm.xlu1 %3486, %v450_v39  }
 0x129   : > { %v453_v0 = vpop.trf.xlu0 }
 0x12a   : > { %485 = vperm.xlu1 %3486, %v419_v23  }
 0x12d   : > { %v454_v28 = vpop.trf.xlu0 }
 0x12e   : > { %565 = vperm.xlu1 %3486, %v451_v3  }
 0x131   : > { %v455_v17 = vpop.trf.xlu0 }
 0x132   : > { %490 = vperm.xlu1 %3486, %v420_v63   ;;  %v2704_v38 = vpop.f32.mrb[0].mxu1 }
 0x133   : > { %v2669_v13 = vpop.f32.mrb[0].mxu0  ;;  %v2705_v54 = vpop.f32.mrb[1].mxu1 }
 0x134   : > { %v2670_v27 = vpop.f32.mrb[1].mxu0  ;;  %v2706_v24 = vadd.f32 %v2705_v54, %v2704_v38 }
 0x135   : > { %v2671_v44 = vadd.f32 %v2670_v27, %v2669_v13  ;;  %v456_v47 = vpop.trf.xlu0  ;;  %v4998_v27 = vld [vmem:[#allocation15_spill] sm:$0xff] }
 0x136   : > { %570 = vperm.xlu1 %3486, %v452_v48   ;;  %v4997_v48 = vld [vmem:[#allocation12_spill] sm:$0xff] }
 0x137   : > { %v840_v20 = vadd.f32 %v2671_v44, %v719_v6 }
 0x139   : > { %v1072_v11 = vadd.f32 %v2706_v24, %v840_v20  ;;  %v457_v9 = vpop.trf.xlu0  ;;  %v5000_v20 = vld [vmem:[#allocation18_spill] sm:$0xff] }
 0x13a   : > { %495 = vperm.xlu1 %3486, %v421_v42   ;;  %v4992_v42 = vld [vmem:[#allocation10_spill] sm:$0xff] }
 0x13d   : > { %v458_v41 = vpop.trf.xlu0 }
 0x13e   : > { %575 = vperm.xlu1 %3486, %v453_v0  }
 0x141   : > { %v459_v58 = vpop.trf.xlu0 }
 0x142   : > { %500 = vperm.xlu1 %3486, %v422_v61  }
 0x145   : > { %v460_v45 = vpop.trf.xlu0 }
 0x146   : > { %580 = vperm.xlu1 %3486, %v454_v28   ;;  %v4999_v28 = vld [vmem:[#allocation13_spill] sm:$0xff] }
 0x149   : > { %v461_v25 = vpop.trf.xlu0 }
 0x14a   : > { %505 = vperm.xlu1 %3486, %v423_v29  }
 0x14d   : > { %v462_v36 = vpop.trf.xlu0 }
 0x14e   : > { %585 = vperm.xlu1 %3486, %v455_v17   ;;  %v5001_v17 = vld [vmem:[#allocation16_spill] sm:$0xff] }
 0x151   : > { %v466_v26 = vpop.permute.xlu1 %465 }
 0x152   : > { %v623_v2 = vmul.f32 %v4991_v52, %v466_v26  ;;  %510 = vperm.xlu1 %3486, %v424_v16   ;;  %v2774_v43 = vpop.f32.mrb[2].mxu1  ;;  %v4993_v16 = vld [vmem:[#allocation8_spill] sm:$0xff] }
 0x153   : > { %v2739_v59 = vpop.f32.mrb[2].mxu0  ;;  %v2775_v32 = vpop.f32.mrb[3].mxu1 }
 0x154   : > { %655 = vst [vmem:[#allocation4] sm:$0xff] %v623_v2  ;;  %v2740_v33 = vpop.f32.mrb[3].mxu0  ;;  %v2776_v7 = vadd.f32 %v2775_v32, %v2774_v43  ;;  %v5002_v2 = vld [vmem:[#allocation19_spill] sm:$0xff]  ;;  %v5004_v32 = vld [vmem:[#allocation22_spill] sm:$0xff] }
 0x155   : > { %v2741_v51 = vadd.f32 %v2740_v33, %v2739_v59  ;;  %v5003_v33 = vld [vmem:[#allocation17_spill] sm:$0xff] }
 0x156   : > { %590 = vperm.xlu1 %3486, %v456_v47  }
 0x157   : > { %v1210_v18 = vadd.f32 %v2741_v51, %v1072_v11 }
 0x159   : > { %v1318_v37 = vadd.f32 %v2776_v7, %v1210_v18 }
 0x15a   : > { %515 = vperm.xlu1 %3486, %v425_v22  }
 0x15e   : > { %595 = vperm.xlu1 %3486, %v457_v9  }
 0x162   : > { %520 = vperm.xlu1 %3486, %v426_v5  }
 0x166   : > { %600 = vperm.xlu1 %3486, %v458_v41  }
 0x16a   : > { %525 = vperm.xlu1 %3486, %v427_v8   ;;  %v4994_v8 = vld [vmem:[#allocation11_spill] sm:$0xff] }
 0x16e   : > { %605 = vperm.xlu1 %3486, %v459_v58   ;;  %v5006_v58 = vld [vmem:[#allocation23_spill] sm:$0xff] }
 0x172   : > { %530 = vperm.xlu1 %3486, %v428_v21   ;;  %v2844_v62 = vpop.f32.mrb[4].mxu1 }
 0x173   : > { %v2809_v46 = vpop.f32.mrb[4].mxu0  ;;  %v2845_v57 = vpop.f32.mrb[5].mxu1 }
 0x174   : > { %v2810_v55 = vpop.f32.mrb[5].mxu0  ;;  %v2846_v4 = vadd.f32 %v2845_v57, %v2844_v62  ;;  %v5008_v57 = vld [vmem:[#allocation26_spill] sm:$0xff] }
 0x175   : > { %v2811_v31 = vadd.f32 %v2810_v55, %v2809_v46  ;;  %v5007_v55 = vld [vmem:[#allocation21_spill] sm:$0xff] }
 0x176   : > { %610 = vperm.xlu1 %3486, %v460_v45  }
 0x177   : > { %v1486_v30 = vadd.f32 %v2811_v31, %v1318_v37  ;;  %v5005_v37 = vld [vmem:[#allocation20_spill] sm:$0xff] }
 0x179   : > { %v1590_v14 = vadd.f32 %v2846_v4, %v1486_v30 }
 0x17a   : > { %535 = vperm.xlu1 %3486, %v4266_v50  }
 0x17b   : > { %1593 = vst [vmem:[#allocation5] sm:$0x1] %v1590_v14  ;;  %v5009_v14 = vld [vmem:[#allocation24_spill] sm:$0xff] }
 0x17e   : > { %615 = vperm.xlu1 %3486, %v461_v25  }
 0x182   : > { %540 = vperm.xlu1 %3486, %v4268_v34   ;;  %v4995_v34 = vld [vmem:[#allocation9_spill] sm:$0xff] }
 0x186   : > { %620 = vperm.xlu1 %3486, %v462_v36  }
 0x191   : > { %v546_v40 = vpop.permute.xlu1 %545 }
 0x192   : > { %v639_v12 = vmul.f32 %v3490_v53, %v546_v40  ;;  %v5010_v40 = vld [vmem:[#allocation27_spill] sm:$0xff] }
 0x194   : > { %671 = vst [vmem:[#allocation4 + $0x80] sm:$0xff] %v639_v12 }
 0x195   : > { %v471_v49 = vpop.permute.xlu1 %470  ;;  %v551_v56 = vpop.permute.xlu0 %550 }
 0x196   : > { %v624_v35 = vmul.f32 %v3491_v19, %v471_v49  ;;  %v640_v23 = vmul.f32 %v3492_v1, %v551_v56  ;;  %v5011_v49 = vld [vmem:[#allocation25_spill] sm:$0xff] }
 0x198   : > { %656 = vst [vmem:[#allocation4 + $0x8] sm:$0xff] %v624_v35  ;;  %672 = vst [vmem:[#allocation4 + $0x88] sm:$0xff] %v640_v23  ;;  %v5012_v35 = vld [vmem:[#allocation31_spill] sm:$0xff] }
 0x199   : > { %v476_v63 = vpop.permute.xlu1 %475 }
 0x19a   : > { %v625_v61 = vmul.f32 %v4992_v42, %v476_v63  ;;  %v5013_v63 = vld [vmem:[#allocation29_spill] sm:$0xff] }
 0x19c   : > { %657 = vst [vmem:[#allocation4 + $0x10] sm:$0xff] %v625_v61 }
 0x19d   : > { %v556_v29 = vpop.permute.xlu1 %555 }
 0x19e   : > { %v641_v22 = vmul.f32 %v4993_v16, %v556_v29  ;;  %v5014_v29 = vld [vmem:[#allocation33_spill] sm:$0xff] }
 0x1a0   : > { %673 = vst [vmem:[#allocation4 + $0x90] sm:$0xff] %v641_v22 }
 0x1a1   : > { %v481_v5 = vpop.permute.xlu1 %480 }
 0x1a2   : > { %v626_v21 = vmul.f32 %v4994_v8, %v481_v5  ;;  %v5015_v5 = vld [vmem:[#allocation30_spill] sm:$0xff] }
 0x1a4   : > { %658 = vst [vmem:[#allocation4 + $0x18] sm:$0xff] %v626_v21 }
 0x1a5   : > { %v561_v50 = vpop.permute.xlu1 %560 }
 0x1a6   : > { %v642_v10 = vmul.f32 %v4995_v34, %v561_v50  ;;  %v5016_v50 = vld [vmem:[#allocation39_spill] sm:$0xff] }
 0x1a8   : > { %674 = vst [vmem:[#allocation4 + $0x98] sm:$0xff] %v642_v10 }
 0x1a9   : > { %v486_v60 = vpop.permute.xlu1 %485 }
 0x1aa   : > { %v627_v39 = vmul.f32 %v4996_v15, %v486_v60  ;;  %v5017_v60 = vld [vmem:[#allocation35_spill] sm:$0xff] }
 0x1ac   : > { %659 = vst [vmem:[#allocation4 + $0x20] sm:$0xff] %v627_v39 }
 0x1ad   : > { %v566_v3 = vpop.permute.xlu1 %565 }
 0x1ae   : > { %v643_v0 = vmul.f32 %v4997_v48, %v566_v3  ;;  %v5018_v3 = vld [vmem:[#allocation40_spill] sm:$0xff] }
 0x1b0   : > { %675 = vst [vmem:[#allocation4 + $0xa0] sm:$0xff] %v643_v0 }
 0x1b1   : > { %v491_v13 = vpop.permute.xlu1 %490 }
 0x1b2   : > { %v628_v44 = vmul.f32 %v4998_v27, %v491_v13  ;;  %v5019_v13 = vld [vmem:[#allocation36_spill] sm:$0xff] }
 0x1b4   : > { %660 = vst [vmem:[#allocation4 + $0x28] sm:$0xff] %v628_v44 }
 0x1b5   : > { %v571_v38 = vpop.permute.xlu1 %570 }
 0x1b6   : > { %v644_v6 = vmul.f32 %v4999_v28, %v571_v38 }
 0x1b8   : > { %676 = vst [vmem:[#allocation4 + $0xa8] sm:$0xff] %v644_v6 }
 0x1b9   : > { %v496_v54 = vpop.permute.xlu1 %495 }
 0x1ba   : > { %v629_v24 = vmul.f32 %v5000_v20, %v496_v54 }
 0x1bc   : > { %661 = vst [vmem:[#allocation4 + $0x30] sm:$0xff] %v629_v24 }
 0x1bd   : > { %v576_v11 = vpop.permute.xlu1 %575 }
 0x1be   : > { %v645_v26 = vmul.f32 %v5001_v17, %v576_v11 }
 0x1c0   : > { %677 = vst [vmem:[#allocation4 + $0xb0] sm:$0xff] %v645_v26 }
 0x1c1   : > { %v501_v52 = vpop.permute.xlu1 %500 }
 0x1c2   : > { %v630_v47 = vmul.f32 %v5002_v2, %v501_v52 }
 0x1c4   : > { %662 = vst [vmem:[#allocation4 + $0x38] sm:$0xff] %v630_v47 }
 0x1c5   : > { %v581_v59 = vpop.permute.xlu1 %580 }
 0x1c6   : > { %v646_v43 = vmul.f32 %v5003_v33, %v581_v59 }
 0x1c8   : > { %678 = vst [vmem:[#allocation4 + $0xb8] sm:$0xff] %v646_v43 }
 0x1c9   : > { %v506_v51 = vpop.permute.xlu1 %505 }
 0x1ca   : > { %v631_v7 = vmul.f32 %v5004_v32, %v506_v51 }
 0x1cc   : > { %663 = vst [vmem:[#allocation4 + $0x40] sm:$0xff] %v631_v7 }
 0x1cd   : > { %v586_v18 = vpop.permute.xlu1 %585 }
 0x1ce   : > { %v647_v9 = vmul.f32 %v5005_v37, %v586_v18 }
 0x1d0   : > { %679 = vst [vmem:[#allocation4 + $0xc0] sm:$0xff] %v647_v9 }
 0x1d1   : > { %v511_v41 = vpop.permute.xlu1 %510 }
 0x1d2   : > { %v632_v45 = vmul.f32 %v5006_v58, %v511_v41 }
 0x1d4   : > { %664 = vst [vmem:[#allocation4 + $0x48] sm:$0xff] %v632_v45 }
 0x1d5   : > { %v591_v46 = vpop.permute.xlu1 %590 }
 0x1d6   : > { %v648_v62 = vmul.f32 %v5007_v55, %v591_v46 }
 0x1d8   : > { %680 = vst [vmem:[#allocation4 + $0xc8] sm:$0xff] %v648_v62 }
 0x1d9   : > { %v516_v31 = vpop.permute.xlu1 %515 }
 0x1da   : > { %v633_v4 = vmul.f32 %v5008_v57, %v516_v31 }
 0x1dc   : > { %665 = vst [vmem:[#allocation4 + $0x50] sm:$0xff] %v633_v4 }
 0x1dd   : > { %v596_v30 = vpop.permute.xlu1 %595 }
 0x1de   : > { %v649_v25 = vmul.f32 %v5009_v14, %v596_v30 }
 0x1e0   : > { %681 = vst [vmem:[#allocation4 + $0xd0] sm:$0xff] %v649_v25 }
 0x1e1   : > { %v521_v36 = vpop.permute.xlu1 %520 }
 0x1e2   : > { %v634_v53 = vmul.f32 %v5010_v40, %v521_v36 }
 0x1e4   : > { %666 = vst [vmem:[#allocation4 + $0x58] sm:$0xff] %v634_v53 }
 0x1e5   : > { %v601_v12 = vpop.permute.xlu1 %600 }
 0x1e6   : > { %v650_v56 = vmul.f32 %v5011_v49, %v601_v12 }
 0x1e8   : > { %682 = vst [vmem:[#allocation4 + $0xd8] sm:$0xff] %v650_v56 }
 0x1e9   : > { %v526_v19 = vpop.permute.xlu1 %525 }
 0x1ea   : > { %v635_v1 = vmul.f32 %v5012_v35, %v526_v19 }
 0x1ec   : > { %667 = vst [vmem:[#allocation4 + $0x60] sm:$0xff] %v635_v1 }
 0x1ed   : > { %v606_v23 = vpop.permute.xlu1 %605 }
 0x1ee   : > { %v651_v42 = vmul.f32 %v5013_v63, %v606_v23 }
 0x1f0   : > { %683 = vst [vmem:[#allocation4 + $0xe0] sm:$0xff] %v651_v42 }
 0x1f1   : > { %v531_v61 = vpop.permute.xlu1 %530 }
 0x1f2   : > { %v636_v16 = vmul.f32 %v5014_v29, %v531_v61 }
 0x1f4   : > { %668 = vst [vmem:[#allocation4 + $0x68] sm:$0xff] %v636_v16 }
 0x1f5   : > { %v611_v22 = vpop.permute.xlu1 %610 }
 0x1f6   : > { %v652_v8 = vmul.f32 %v5015_v5, %v611_v22 }
 0x1f8   : > { %684 = vst [vmem:[#allocation4 + $0xe8] sm:$0xff] %v652_v8 }
 0x1f9   : > { %v536_v21 = vpop.permute.xlu1 %535 }
 0x1fa   : > { %v637_v34 = vmul.f32 %v5016_v50, %v536_v21 }
 0x1fc   : > { %669 = vst [vmem:[#allocation4 + $0x70] sm:$0xff] %v637_v34 }
 0x1fd   : > { %v616_v10 = vpop.permute.xlu1 %615 }
 0x1fe   : > { %v653_v15 = vmul.f32 %v5017_v60, %v616_v10 }
 0x200   : > { %685 = vst [vmem:[#allocation4 + $0xf0] sm:$0xff] %v653_v15 }
 0x201   : > { %v541_v39 = vpop.permute.xlu1 %540 }
 0x202   : > { %v638_v48 = vmul.f32 %v5018_v3, %v541_v39 }
 0x204   : > { %670 = vst [vmem:[#allocation4 + $0x78] sm:$0xff] %v638_v48 }
 0x205   : > { %v621_v0 = vpop.permute.xlu1 %620 }
 0x206   : > { %v654_v27 = vmul.f32 %v5019_v13, %v621_v0 }
 0x208   : > { %686 = vst [vmem:[#allocation4 + $0xf8] sm:$0xff] %v654_v27 }
 0x209 PF: > { %p2631_p5 = scmp.ne.s32.totalorder %s3507_s18, 1 }
 0x20b   : > { %1597 = sbr.rel (%p2631_p5) target bundleno = 877 (0x36d), region = 56 }
 0x212   : > { %v1618_v44 = vld [vmem:[#allocation4 + $0x80] sm:$0xff]  ;;  %v1619_v38 = vld [vmem:[#allocation4 + $0x88] sm:$0xff]  ;;  %v1620_v11 = vld [vmem:[#allocation4 + $0x90] sm:$0xff] }
 0x213   : > { %v1602_v28 = vld [vmem:[#allocation4] sm:$0xff]  ;;  %v1690_v6 = vand.u32 4294901760, %v1618_v44  ;;  %v1693_v54 = vand.u32 4294901760, %v1619_v38  ;;  %v1603_v20 = vld [vmem:[#allocation4 + $0x8] sm:$0xff]  ;;  %v1621_v17 = vld [vmem:[#allocation4 + $0x98] sm:$0xff]  ;;  %v1696_v52 = vand.u32 4294901760, %v1620_v11 }
 0x214   : > { %v1642_v24 = vand.u32 4294901760, %v1602_v28  ;;  %v1645_v26 = vand.u32 4294901760, %v1603_v20  ;;  %v1699_v2 = vand.u32 4294901760, %v1621_v17  ;;  %v1604_v47 = vld [vmem:[#allocation4 + $0x10] sm:$0xff]  ;;  %v1605_v59 = vld [vmem:[#allocation4 + $0x18] sm:$0xff]  ;;  %v1622_v7 = vld [vmem:[#allocation4 + $0xa0] sm:$0xff] }
 0x215   : > { %v4314_v33 = vpack.c.bf16 %v1693_v54, %v1690_v6  ;;  %v1648_v51 = vand.u32 4294901760, %v1604_v47  ;;  %v1651_v32 = vand.u32 4294901760, %v1605_v59  ;;  %v1623_v18 = vld [vmem:[#allocation4 + $0xa8] sm:$0xff]  ;;  %v1606_v58 = vld [vmem:[#allocation4 + $0x20] sm:$0xff]  ;;  %v4325_v46 = vsub.f32 %v1620_v11, %v1696_v52  ;;  %v1624_v12 = vld [vmem:[#allocation4 + $0xb0] sm:$0xff] }
 0x216   : > { %v4316_v43 = vsub.f32 %v1602_v28, %v1642_v24  ;;  %v4318_v37 = vpack.c.bf16 %v1645_v26, %v1642_v24  ;;  %v4320_v9 = vsub.f32 %v1603_v20, %v1645_v26  ;;  %v4322_v41 = vpack.c.bf16 %v1699_v2, %v1696_v52  ;;  %v1607_v45 = vld [vmem:[#allocation4 + $0x28] sm:$0xff]  ;;  %v1625_v1 = vld [vmem:[#allocation4 + $0xb8] sm:$0xff]  ;;  %v1608_v10 = vld [vmem:[#allocation4 + $0x30] sm:$0xff] }
 0x217   : > { %3268 = vmatprep.subr.bf16.mxu0 %v4314_v33  ;;  %v4327_v55 = vsub.f32 %v1621_v17, %v1699_v2  ;;  %v4329_v62 = vpack.c.bf16 %v1651_v32, %v1648_v51  ;;  %v4331_v31 = vsub.f32 %v1604_v47, %v1648_v51  ;;  %v1702_v57 = vand.u32 4294901760, %v1622_v7  ;;  %v1609_v60 = vld [vmem:[#allocation4 + $0x38] sm:$0xff]  ;;  %v1626_v20 = vld [vmem:[#allocation4 + $0xc0] sm:$0xff]  ;;  %v1627_v24 = vld [vmem:[#allocation4 + $0xc8] sm:$0xff] }
 0x218   : > { %3270 = vmatpush3.bf16.msra.mxu0 %v4318_v37  ;;  %v1705_v4 = vand.u32 4294901760, %v1623_v18  ;;  %v4334_v30 = vsub.f32 %v1618_v44, %v1690_v6  ;;  %v4336_v14 = vsub.f32 %v1619_v38, %v1693_v54  ;;  %v1654_v25 = vand.u32 4294901760, %v1606_v58  ;;  %v1610_v2 = vld [vmem:[#allocation4 + $0x40] sm:$0xff] }
 0x219   : > { %3272 = vmatprep.subr.bf16.mxu0 %v4322_v41  ;;  %v1657_v36 = vand.u32 4294901760, %v1607_v45  ;;  %v4870_v40 = vand.u32 4294901760, %v4316_v43  ;;  %v4869_v53 = vand.u32 4294901760, %v4320_v9  ;;  %v4341_v49 = vsub.f32 %v1605_v59, %v1651_v32 }
 0x21a   : > { %v4343_v56 = vpack.c.bf16 %v1705_v4, %v1702_v57  ;;  %v4345_v19 = vsub.f32 %v1622_v7, %v1702_v57  ;;  %v4876_v35 = vand.u32 4294901760, %v4334_v30  ;;  %v4348_v23 = vsub.f32 %v1623_v18, %v1705_v4  ;;  %v1611_v57 = vld [vmem:[#allocation4 + $0x48] sm:$0xff] }
 0x21b   : > { %v4872_v63 = vand.u32 4294901760, %v4336_v14  ;;  %v4351_v42 = vpack.c.bf16 %v1657_v36, %v1654_v25  ;;  %v4353_v61 = vsub.f32 %v1606_v58, %v1654_v25  ;;  %v1772_v16 = vsub.f32 %v4316_v43, %v4870_v40 }
 0x21c   : > { %3274 = vmatpush3.bf16.msra.mxu0 %v4329_v62  ;;  %v1884_v29 = vsub.f32 %v4334_v30, %v4876_v35  ;;  %v1779_v22 = vsub.f32 %v4320_v9, %v4869_v53  ;;  %v1708_v5 = vand.u32 4294901760, %v1624_v12  ;;  %v1711_v21 = vand.u32 4294901760, %v1625_v1 }
 0x21d   : > { %3276 = vmatprep.subr.bf16.mxu0 %v4343_v56  ;;  %v1891_v8 = vsub.f32 %v4336_v14, %v4872_v63  ;;  %v4867_v50 = vand.u32 4294901760, %v4325_v46  ;;  %v4865_v34 = vand.u32 4294901760, %v4327_v55  ;;  %v4371_v39 = vsub.f32 %v1607_v45, %v1657_v36 }
 0x21e   : > { %v1885_v15 = vand.u32 4294901760, %v1884_v29  ;;  %v1773_v3 = vand.u32 4294901760, %v1772_v16  ;;  %v1780_v48 = vand.u32 4294901760, %v1779_v22  ;;  %v4373_v13 = vpack.c.bf16 %v1711_v21, %v1708_v5 }
 0x21f   : > { %v1892_v0 = vand.u32 4294901760, %v1891_v8  ;;  %v4375_v27 = vsub.f32 %v1624_v12, %v1708_v5  ;;  %v1898_v44 = vsub.f32 %v4325_v46, %v4867_v50  ;;  %v1905_v28 = vsub.f32 %v4327_v55, %v4865_v34  ;;  %v1633_v34 = vld [vmem:[#allocation4 + $0xf8] sm:$0xff] }
 0x220   : > { %3278 = vmatpush3.bf16.msra.mxu0 %v4351_v42  ;;  %v3301_v38 = vpack.c.bf16 %v1780_v48, %v1773_v3  ;;  %v1660_v6 = vand.u32 4294901760, %v1608_v10  ;;  %v1663_v54 = vand.u32 4294901760, %v1609_v60  ;;  %v4864_v26 = vand.u32 4294901760, %v4331_v31  ;;  %v1629_v3 = vld [vmem:[#allocation4 + $0xd8] sm:$0xff] }
 0x221   : > { %v3299_v11 = vpack.c.bf16 %v1892_v0, %v1885_v15  ;;  %3280 = vmatprep.subr.bf16.mxu0 %v4373_v13  ;;  %v1899_v17 = vand.u32 4294901760, %v1898_v44  ;;  %v4862_v52 = vand.u32 4294901760, %v4341_v49  ;;  %v4387_v47 = vsub.f32 %v1625_v1, %v1711_v21  ;;  %v1628_v15 = vld [vmem:[#allocation4 + $0xd0] sm:$0xff] }
 0x222   : > { %v1906_v59 = vand.u32 4294901760, %v1905_v28  ;;  %v4389_v51 = vpack.c.bf16 %v1663_v54, %v1660_v6  ;;  %v4391_v32 = vsub.f32 %v1608_v10, %v1660_v6  ;;  %v1786_v7 = vsub.f32 %v4331_v31, %v4864_v26  ;;  %v1632_v26 = vld [vmem:[#allocation4 + $0xf0] sm:$0xff] }
 0x223   : > { %3300 = vmatprep.subr.bf16.mxu1 %v3299_v11  ;;  %v1793_v18 = vsub.f32 %v4341_v49, %v4862_v52  ;;  %v1714_v58 = vand.u32 4294901760, %v1626_v20  ;;  %v1717_v45 = vand.u32 4294901760, %v1627_v24  ;;  %v4860_v25 = vand.u32 4294901760, %v4345_v19 }
 0x224   : > { %3302 = vmatpush3.bf16.msra.mxu1 %v3301_v38  ;;  %v3303_v4 = vpack.c.bf16 %v1906_v59, %v1899_v17  ;;  %3282 = vmatpush3.bf16.msra.mxu0 %v4389_v51  ;;  %v4859_v36 = vand.u32 4294901760, %v4348_v23  ;;  %v1666_v12 = vand.u32 4294901760, %v1610_v2  ;;  %v4402_v1 = vsub.f32 %v1609_v60, %v1663_v54  ;;  %v1612_v38 = vld [vmem:[#allocation4 + $0x50] sm:$0xff] }
 0x225   : > { %v1787_v29 = vand.u32 4294901760, %v1786_v7  ;;  %v1794_v16 = vand.u32 4294901760, %v1793_v18  ;;  %v4404_v22 = vpack.c.bf16 %v1717_v45, %v1714_v58  ;;  %v4406_v5 = vsub.f32 %v1626_v20, %v1714_v58  ;;  %v1613_v7 = vld [vmem:[#allocation4 + $0x58] sm:$0xff] }
 0x226   : > { %3304 = vmatprep.subr.bf16.mxu1 %v3303_v4  ;;  %v1912_v8 = vsub.f32 %v4345_v19, %v4860_v25  ;;  %v1919_v21 = vsub.f32 %v4348_v23, %v4859_v36  ;;  %v1669_v10 = vand.u32 4294901760, %v1611_v57  ;;  %v4415_v48 = vsub.f32 %v1627_v24, %v1717_v45 }
 0x227   : > { %v3305_v60 = vpack.c.bf16 %v1794_v16, %v1787_v29  ;;  %3284 = vmatprep.subr.bf16.mxu0 %v4404_v22  ;;  %v4857_v0 = vand.u32 4294901760, %v4353_v61  ;;  %v4855_v44 = vand.u32 4294901760, %v4371_v39  ;;  %v4421_v20 = vsub.f32 %v1610_v2, %v1666_v12 }
 0x228   : > { %v1913_v28 = vand.u32 4294901760, %v1912_v8  ;;  %v1920_v6 = vand.u32 4294901760, %v1919_v21  ;;  %v4419_v54 = vpack.c.bf16 %v1669_v10, %v1666_v12  ;;  %v1720_v17 = vand.u32 4294901760, %v1628_v15 }
 0x229   : > { %3306 = vmatpush3.bf16.msra.mxu1 %v3305_v60  ;;  %v1800_v11 = vsub.f32 %v4353_v61, %v4857_v0  ;;  %v1807_v24 = vsub.f32 %v4371_v39, %v4855_v44  ;;  %v1723_v59 = vand.u32 4294901760, %v1629_v3  ;;  %v4856_v58 = vand.u32 4294901760, %v4375_v27  ;;  %v1631_v44 = vld [vmem:[#allocation4 + $0xe8] sm:$0xff] }
 0x22a   : > { %v3307_v18 = vpack.c.bf16 %v1920_v6, %v1913_v28  ;;  %3286 = vmatpush3.bf16.msra.mxu0 %v4419_v54  ;;  %v4858_v2 = vand.u32 4294901760, %v4387_v47  ;;  %v1672_v45 = vand.u32 4294901760, %v1612_v38  ;;  %v4432_v4 = vsub.f32 %v1611_v57, %v1669_v10  ;;  %v1630_v6 = vld [vmem:[#allocation4 + $0xe0] sm:$0xff] }
 0x22b   : > { %v1801_v12 = vand.u32 4294901760, %v1800_v11  ;;  %v1808_v29 = vand.u32 4294901760, %v1807_v24  ;;  %v4434_v16 = vpack.c.bf16 %v1723_v59, %v1720_v17  ;;  %v4436_v8 = vsub.f32 %v1628_v15, %v1720_v17  ;;  %v1614_v24 = vld [vmem:[#allocation4 + $0x60] sm:$0xff] }
 0x22c   : > { %3308 = vmatprep.subr.bf16.mxu1 %v3307_v18  ;;  %v1926_v21 = vsub.f32 %v4375_v27, %v4856_v58  ;;  %v1933_v60 = vsub.f32 %v4387_v47, %v4858_v2  ;;  %v1675_v28 = vand.u32 4294901760, %v1613_v7  ;;  %v4445_v10 = vsub.f32 %v1629_v3, %v1723_v59  ;;  %v1615_v2 = vld [vmem:[#allocation4 + $0x68] sm:$0xff] }
 0x22d   : > { %5020 = vst [vmem:[#allocation41_spill] sm:$0xff] %v4434_v16  ;;  %v3309_v57 = vpack.c.bf16 %v1808_v29, %v1801_v12  ;;  %3288 = vmatprep.subr.bf16.mxu0 %v4434_v16  ;;  %v4861_v11 = vand.u32 4294901760, %v4391_v32  ;;  %v4863_v15 = vand.u32 4294901760, %v4402_v1  ;;  %v4451_v0 = vsub.f32 %v1612_v38, %v1672_v45 }
 0x22e   : > { %v1927_v17 = vand.u32 4294901760, %v1926_v21  ;;  %v1934_v18 = vand.u32 4294901760, %v1933_v60  ;;  %v4449_v58 = vpack.c.bf16 %v1675_v28, %v1672_v45  ;;  %v1726_v59 = vand.u32 4294901760, %v1630_v6 }
 0x22f   : > { %3310 = vmatpush3.bf16.msra.mxu1 %v3309_v57  ;;  %v1814_v12 = vsub.f32 %v4391_v32, %v4861_v11  ;;  %v1821_v3 = vsub.f32 %v4402_v1, %v4863_v15  ;;  %v1729_v29 = vand.u32 4294901760, %v1631_v44  ;;  %v4866_v21 = vand.u32 4294901760, %v4406_v5 }
 0x230   : > { %5021 = vst [vmem:[#allocation42_spill] sm:$0xff] %v4449_v58  ;;  %v3311_v36 = vpack.c.bf16 %v1934_v18, %v1927_v17  ;;  %3290 = vmatpush3.bf16.msra.mxu0 %v4449_v58  ;;  %v4868_v38 = vand.u32 4294901760, %v4415_v48  ;;  %v1678_v45 = vand.u32 4294901760, %v1614_v24  ;;  %v4462_v60 = vsub.f32 %v1613_v7, %v1675_v28 }
 0x231   : > { %v1815_v57 = vand.u32 4294901760, %v1814_v12  ;;  %v1822_v25 = vand.u32 4294901760, %v1821_v3  ;;  %v4464_v11 = vpack.c.bf16 %v1729_v29, %v1726_v59  ;;  %v4466_v52 = vsub.f32 %v1630_v6, %v1726_v59  ;;  %v1616_v12 = vld [vmem:[#allocation4 + $0x70] sm:$0xff] }
 0x232   : > { %3312 = vmatprep.subr.bf16.mxu1 %v3311_v36  ;;  %v1940_v17 = vsub.f32 %v4406_v5, %v4866_v21  ;;  %v1947_v18 = vsub.f32 %v4415_v48, %v4868_v38  ;;  %v1681_v15 = vand.u32 4294901760, %v1615_v2  ;;  %v4475_v28 = vsub.f32 %v1631_v44, %v1729_v29  ;;  %v1617_v38 = vld [vmem:[#allocation4 + $0x78] sm:$0xff] }
 0x233   : > { %5022 = vst [vmem:[#allocation43_spill] sm:$0xff] %v4464_v11  ;;  %v3313_v7 = vpack.c.bf16 %v1822_v25, %v1815_v57  ;;  %3292 = vmatprep.subr.bf16.mxu0 %v4464_v11  ;;  %v4871_v36 = vand.u32 4294901760, %v4421_v20  ;;  %v4873_v6 = vand.u32 4294901760, %v4432_v4  ;;  %v4481_v50 = vsub.f32 %v1614_v24, %v1678_v45 }
 0x234   : > { %v1941_v3 = vand.u32 4294901760, %v1940_v17  ;;  %v1948_v59 = vand.u32 4294901760, %v1947_v18  ;;  %v4479_v21 = vpack.c.bf16 %v1681_v15, %v1678_v45  ;;  %v1732_v29 = vand.u32 4294901760, %v1632_v26 }
 0x235   : > { %3314 = vmatpush3.bf16.msra.mxu1 %v3313_v7  ;;  %v1828_v25 = vsub.f32 %v4421_v20, %v4871_v36  ;;  %v1835_v44 = vsub.f32 %v4432_v4, %v4873_v6  ;;  %v1735_v57 = vand.u32 4294901760, %v1633_v34  ;;  %v4875_v17 = vand.u32 4294901760, %v4436_v8 }
 0x236   : > { %5023 = vst [vmem:[#allocation44_spill] sm:$0xff] %v4479_v21  ;;  %v3315_v53 = vpack.c.bf16 %v1948_v59, %v1941_v3  ;;  %3294 = vmatpush3.bf16.msra.mxu0 %v4479_v21  ;;  %v4874_v24 = vand.u32 4294901760, %v4445_v10  ;;  %v1684_v45 = vand.u32 4294901760, %v1616_v12  ;;  %v4492_v18 = vsub.f32 %v1615_v2, %v1681_v15  ;;  %v1599_v2 = vld [vmem:[%s4781_s0 + $0x8] sm:$0xff] }
 0x237   : > { %v1829_v7 = vand.u32 4294901760, %v1828_v25  ;;  %v1836_v40 = vand.u32 4294901760, %v1835_v44  ;;  %v4494_v36 = vpack.c.bf16 %v1735_v57, %v1732_v29  ;;  %v4496_v63 = vsub.f32 %v1632_v26, %v1732_v29  ;;  %v1598_v44 = vld [vmem:[%s4781_s0] sm:$0xff] }
 0x238   : > { %3316 = vmatprep.subr.bf16.mxu1 %v3315_v53  ;;  %v1954_v3 = vsub.f32 %v4436_v8, %v4875_v17  ;;  %v1961_v59 = vsub.f32 %v4445_v10, %v4874_v24  ;;  %v1687_v6 = vand.u32 4294901760, %v1617_v38  ;;  %v4508_v25 = vsub.f32 %v1633_v34, %v1735_v57 }
 0x239   : > { %5024 = vst [vmem:[#allocation45_spill] sm:$0xff] %v4494_v36  ;;  %v3317_v15 = vpack.c.bf16 %v1836_v40, %v1829_v7  ;;  %3296 = vmatprep.subr.bf16.mxu0 %v4494_v36  ;;  %v4879_v53 = vand.u32 4294901760, %v4451_v0  ;;  %v4880_v26 = vand.u32 4294901760, %v4462_v60  ;;  %v4517_v35 = vsub.f32 %v1616_v12, %v1684_v45 }
 0x23a   : > { %v1955_v29 = vand.u32 4294901760, %v1954_v3  ;;  %v1962_v24 = vand.u32 4294901760, %v1961_v59  ;;  %v4515_v17 = vpack.c.bf16 %v1687_v6, %v1684_v45  ;;  %v4525_v57 = vand.u32 4294901760, %v1599_v2 }
 0x23b   : > { %3318 = vmatpush3.bf16.msra.mxu1 %v3317_v15  ;;  %v1842_v40 = vsub.f32 %v4451_v0, %v4879_v53  ;;  %v1849_v34 = vsub.f32 %v4462_v60, %v4880_v26  ;;  %v4883_v7 = vand.u32 4294901760, %v4466_v52  ;;  %v4889_v3 = vand.u32 4294901760, %v4475_v28 }
 0x23c   : > { %5025 = vst [vmem:[#allocation46_spill] sm:$0xff] %v4515_v17  ;;  %5026 = vst [vmem:[#allocation47_spill] sm:$0xff] %v4525_v57  ;;  %v3319_v36 = vpack.c.bf16 %v1962_v24, %v1955_v29  ;;  %3298 = vmatpush3.bf16.msra.mxu0 %v4515_v17  ;;  %v3331_v12 = vpack.c.bf16 %v4336_v14, %v4334_v30  ;;  %v4532_v45 = vand.u32 4294901760, %v1598_v44  ;;  %1993 = vmatprep.mubr.f32.mxu1 %v4525_v57 }
 0x23d   : > { %v1843_v59 = vand.u32 4294901760, %v1842_v40  ;;  %v1850_v15 = vand.u32 4294901760, %v1849_v34  ;;  %v4535_v53 = vsub.f32 %v1599_v2, %v4525_v57  ;;  %v1968_v26 = vsub.f32 %v4466_v52, %v4883_v7 }
 0x23e   : > { %3320 = vmatprep.subr.bf16.mxu1 %v3319_v36  ;;  %v1975_v24 = vsub.f32 %v4475_v28, %v4889_v3  ;;  %3332 = vmatprep.subr.bf16.mxu0 %v3331_v12  ;;  %v4545_v29 = vsub.f32 %v1598_v44, %v4532_v45  ;;  %v4888_v40 = vand.u32 4294901760, %v4481_v50  ;;  %v4890_v2 = vand.u32 4294901760, %v4492_v18 }
 0x23f   : > { %v4549_v34 = vsub.f32 %v1617_v38, %v1687_v6  ;;  %v3321_v17 = vpack.c.bf16 %v1850_v15, %v1843_v59  ;;  %v4891_v7 = vand.u32 4294901760, %v4535_v53  ;;  %v1969_v21 = vand.u32 4294901760, %v1968_v26 }
 0x240   : > { %5027 = vst [vmem:[#allocation48_spill] sm:$0xff] %v4545_v29  ;;  %v1976_v57 = vand.u32 4294901760, %v1975_v24  ;;  %v4894_v36 = vand.u32 4294901760, %v4545_v29  ;;  %v1856_v12 = vsub.f32 %v4481_v50, %v4888_v40  ;;  %v1863_v44 = vsub.f32 %v4492_v18, %v4890_v2 }
 0x241   : > { %3322 = vmatpush3.bf16.msra.mxu1 %v3321_v17  ;;  %v1740_v38 = vsub.f32 %v4535_v53, %v4891_v7  ;;  %v3333_v6 = vpack.c.bf16 %v4320_v9, %v4316_v43  ;;  %v4895_v26 = vand.u32 4294901760, %v4496_v63  ;;  %v4896_v59 = vand.u32 4294901760, %v4508_v25 }
 0x242   : > { %v3323_v15 = vpack.c.bf16 %v1976_v57, %v1969_v21  ;;  %v1746_v24 = vsub.f32 %v4545_v29, %v4894_v36  ;;  %v1857_v40 = vand.u32 4294901760, %v1856_v12  ;;  %v1864_v3 = vand.u32 4294901760, %v1863_v44  ;;  %v1601_v21 = vld [vmem:[%s4781_s0 + $0x18] sm:$0xff] }
 0x243   : > { %v1741_v2 = vand.u32 4294901760, %v1740_v38  ;;  %v1982_v17 = vsub.f32 %v4496_v63, %v4895_v26  ;;  %v1989_v7 = vsub.f32 %v4508_v25, %v4896_v59  ;;  %v4898_v11 = vand.u32 4294901760, %v4517_v35 }
 0x244   : > { %3324 = vmatprep.subr.bf16.mxu1 %v3323_v15  ;;  %v1747_v57 = vand.u32 4294901760, %v1746_v24  ;;  %v3325_v36 = vpack.c.bf16 %v1864_v3, %v1857_v40  ;;  %v3335_v12 = vpack.c.bf16 %v4327_v55, %v4325_v46  ;;  %v4897_v44 = vand.u32 4294901760, %v4549_v34  ;;  %v1600_v3 = vld [vmem:[%s4781_s0 + $0x10] sm:$0xff] }
 0x245   : > { %1742 = vmatprep.mubr.f32.mxu0 %v1741_v2  ;;  %v1983_v38 = vand.u32 4294901760, %v1982_v17  ;;  %v1990_v26 = vand.u32 4294901760, %v1989_v7  ;;  %v1870_v59 = vsub.f32 %v4517_v35, %v4898_v11  ;;  %v4588_v24 = vand.u32 4294901760, %v1601_v21 }
 0x246   : > { %1748 = vmatmul.mubr.f32.vlgmr.msra.gmra.mrb[0].mxu0 %v1747_v57  ;;  %3326 = vmatpush3.bf16.msra.mxu1 %v3325_v36  ;;  %v1877_v15 = vsub.f32 %v4549_v34, %v4897_v44  ;;  %v3337_v7 = vpack.c.bf16 %v4341_v49, %v4331_v31  ;;  %v3339_v36 = vpack.c.bf16 %v4348_v23, %v4345_v19  ;;  %v4600_v44 = vand.u32 4294901760, %v1600_v3 }
 0x247   : > { %3334 = vmatpush3.bf16.msra.mxu0 %v3333_v6  ;;  %v3327_v40 = vpack.c.bf16 %v1990_v26, %v1983_v38  ;;  %v1871_v2 = vand.u32 4294901760, %v1870_v59  ;;  %v4598_v57 = vsub.f32 %v1601_v21, %v4588_v24  ;;  %v3341_v6 = vpack.c.bf16 %v4371_v39, %v4353_v61 }
 0x248   : > { %3336 = vmatprep.subr.bf16.mxu0 %v3335_v12  ;;  %v1878_v17 = vand.u32 4294901760, %v1877_v15  ;;  %v3343_v26 = vpack.c.bf16 %v4387_v47, %v4375_v27  ;;  %v5028_v59 = vand.u32 4294901760, %v4334_v30  ;;  %v5029_v12 = vand.u32 4294901760, %v4336_v14 }
 0x249   : > { %3328 = vmatprep.subr.bf16.mxu1 %v3327_v40  ;;  %v1754_v15 = vand.u32 4294901760, %v4598_v57  ;;  %v4612_v21 = vsub.f32 %v1600_v3, %v4600_v44  ;;  %v5030_v40 = vand.u32 4294901760, %v4316_v43  ;;  %v5032_v29 = vand.u32 4294901760, %v4325_v46 }
 0x24a   : > { %v3329_v11 = vpack.c.bf16 %v1878_v17, %v1871_v2  ;;  %v3395_v38 = vpack.c.bf16 %v5029_v12, %v5028_v59  ;;  %v5031_v2 = vand.u32 4294901760, %v4320_v9  ;;  %v5033_v58 = vand.u32 4294901760, %v4327_v55 }
 0x24b   : > { %3338 = vmatpush3.bf16.msra.mxu0 %v3337_v7  ;;  %v5034_v30 = vand.u32 4294901760, %v4331_v31  ;;  %v5035_v14 = vand.u32 4294901760, %v4341_v49  ;;  %v5036_v3 = vand.u32 4294901760, %v4345_v19  ;;  %v5037_v59 = vand.u32 4294901760, %v4348_v23 }
 0x24c   : > { %v3397_v17 = vpack.c.bf16 %v5031_v2, %v5030_v40  ;;  %v3399_v16 = vpack.c.bf16 %v5033_v58, %v5032_v29  ;;  %3330 = vmatpush3.bf16.msra.mxu1 %v3329_v11  ;;  %3340 = vmatprep.subr.bf16.mxu0 %v3339_v36  ;;  %v5038_v9 = vand.u32 4294901760, %v4353_v61  ;;  %v5039_v12 = vand.u32 4294901760, %v4371_v39 }
 0x24d   : > { %v3401_v7 = vpack.c.bf16 %v5035_v14, %v5034_v30  ;;  %v3403_v43 = vpack.c.bf16 %v5037_v59, %v5036_v3  ;;  %3364 = vmatprep.subr.bf16.mxu1 %v4314_v33  ;;  %v1755_v55 = vsub.f32 %v4598_v57, %v1754_v15  ;;  %v1760_v31 = vand.u32 4294901760, %v4612_v21 }
 0x24e   : > { %v4634_v46 = vpack.c.bf16 %v5039_v12, %v5038_v9  ;;  %v5040_v49 = vand.u32 4294901760, %v4375_v27  ;;  %v5041_v19 = vand.u32 4294901760, %v4387_v47  ;;  %v5042_v58 = vand.u32 4294901760, %v4391_v32  ;;  %v5050_v9 = vld [vmem:[#allocation42_spill] sm:$0xff]  ;;  %v5051_v12 = vld [vmem:[#allocation43_spill] sm:$0xff] }
 0x24f   : > { %v5043_v61 = vand.u32 4294901760, %v4402_v1  ;;  %v5044_v11 = vand.u32 4294901760, %v4406_v5  ;;  %v5045_v29 = vand.u32 4294901760, %v4415_v48  ;;  %v5046_v40 = vand.u32 4294901760, %v4421_v20  ;;  %1995 = vmatmul.mubr.f32.vlgmr.msra.gmra.mrb[0].mxu1 %v4532_v45  ;;  %3342 = vmatpush3.bf16.msra.mxu0 %v3341_v6 }
 0x250   : > { %v3407_v23 = vpack.c.bf16 %v5041_v19, %v5040_v49  ;;  %v5047_v2 = vand.u32 4294901760, %v4432_v4  ;;  %v3345_v47 = vpack.c.bf16 %v4402_v1, %v4391_v32  ;;  %v1756_v30 = vand.u32 4294901760, %v1755_v55  ;;  %3366 = vmatpush3.bf16.msra.mxu1 %v4318_v37  ;;  %3344 = vmatprep.subr.bf16.mxu0 %v3343_v26  ;;  %v5049_v26 = vld [vmem:[#allocation41_spill] sm:$0xff]  ;;  %v5052_v55 = vld [vmem:[#allocation48_spill] sm:$0xff] }
 0x251   : > { %v4649_v39 = vpack.c.bf16 %v5043_v61, %v5042_v58  ;;  %v4655_v36 = vpack.c.bf16 %v5045_v29, %v5044_v11  ;;  %v1761_v14 = vsub.f32 %v4612_v21, %v1760_v31  ;;  %v3347_v3 = vpack.c.bf16 %v4415_v48, %v4406_v5  ;;  %3368 = vmatprep.subr.bf16.mxu1 %v4322_v41  ;;  %v5053_v49 = vld [vmem:[#allocation44_spill] sm:$0xff]  ;;  %v5054_v19 = vld [vmem:[#allocation45_spill] sm:$0xff]  ;;  %v5055_v58 = vld [vmem:[#allocation47_spill] sm:$0xff] }
 0x252   : > { %v4661_v27 = vpack.c.bf16 %v5047_v2, %v5046_v40  ;;  %1757 = vmatprep.mubr.f32.mxu0 %v1756_v30  ;;  %2000 = vmatprep.mubr.f32.mxu1 %v4588_v24  ;;  %v3349_v32 = vpack.c.bf16 %v4432_v4, %v4421_v20  ;;  %v3351_v1 = vpack.c.bf16 %v4445_v10, %v4436_v8  ;;  %v5048_v5 = vand.u32 4294901760, %v4535_v53  ;;  %v5056_v61 = vld [vmem:[#allocation46_spill] sm:$0xff] }
 0x253   : > { %v1762_v59 = vand.u32 4294901760, %v1761_v14  ;;  %3346 = vmatpush3.bf16.msra.mxu0 %v3345_v47  ;;  %2002 = vmatmul.mubr.f32.gmra.mrb[2].mxu1 %v4600_v44  ;;  %v3353_v48 = vpack.c.bf16 %v4462_v60, %v4451_v0  ;;  %v3355_v20 = vpack.c.bf16 %v4475_v28, %v4466_v52  ;;  %v3357_v4 = vpack.c.bf16 %v4492_v18, %v4481_v50 }
 0x254   : > { %3370 = vmatpush3.bf16.msra.mxu1 %v4329_v62  ;;  %3348 = vmatprep.subr.bf16.mxu0 %v3347_v3  ;;  %v3361_v6 = vpack.c.bf16 %v4549_v34, %v4517_v35 }
 0x255   : > { %3372 = vmatprep.subr.bf16.mxu1 %v4343_v56  ;;  %1763 = vmatmul.mubr.f32.gmra.mrb[2].mxu0 %v1762_v59 }
 0x256   : > { %2137 = vmatprep.mubr.f32.mxu0 %v4535_v53  ;;  %2253 = vmatprep.mubr.f32.mxu1 %v5048_v5  ;;  %v3359_v53 = vpack.c.bf16 %v4508_v25, %v4496_v63 }
 0x257   : > { %3350 = vmatpush3.bf16.msra.mxu0 %v3349_v32 }
 0x258   : > { %3374 = vmatpush3.bf16.msra.mxu1 %v4351_v42  ;;  %3352 = vmatprep.subr.bf16.mxu0 %v3351_v1 }
 0x259   : > { %3376 = vmatprep.subr.bf16.mxu1 %v4373_v13 }
 0x25b   : > { %3354 = vmatpush3.bf16.msra.mxu0 %v3353_v48 }
 0x25c   : > { %3378 = vmatpush3.bf16.msra.mxu1 %v4389_v51  ;;  %3356 = vmatprep.subr.bf16.mxu0 %v3355_v20 }
 0x25d   : > { %3380 = vmatprep.subr.bf16.mxu1 %v4404_v22 }
 0x25f   : > { %3358 = vmatpush3.bf16.msra.mxu0 %v3357_v4 }
 0x260   : > { %3382 = vmatpush3.bf16.msra.mxu1 %v4419_v54  ;;  %3360 = vmatprep.subr.bf16.mxu0 %v3359_v53 }
 0x261   : > { %3384 = vmatprep.subr.bf16.mxu1 %v5049_v26 }
 0x263   : > { %3362 = vmatpush3.bf16.msra.mxu0 %v3361_v6 }
 0x264   : > { %3386 = vmatpush3.bf16.msra.mxu1 %v5050_v9  ;;  %3396 = vmatprep.subr.bf16.mxu0 %v3395_v38  ;;  %v5057_v38 = vand.u32 4294901760, %v5052_v55 }
 0x265   : > { %3388 = vmatprep.subr.bf16.mxu1 %v5051_v12 }
 0x266   : > { %2140 = vmatmul.mubr.f32.vlgmr.msra.gmra.mrb[4].mxu0 %v5052_v55 }
 0x267   : > { %3398 = vmatpush3.bf16.msra.mxu0 %v3397_v17  ;;  %2146 = vmatprep.mubr.f32.mxu0 %v4598_v57  ;;  %v5061_v57 = vand.u32 4294901760, %v4462_v60 }
 0x268   : > { %3390 = vmatpush3.bf16.msra.mxu1 %v5053_v49  ;;  %3400 = vmatprep.subr.bf16.mxu0 %v3399_v16  ;;  %v5059_v16 = vand.u32 4294901760, %v4445_v10 }
 0x269   : > { %3392 = vmatprep.subr.bf16.mxu1 %v5054_v19 }
 0x26a   : > { %2149 = vmatmul.mubr.f32.gmra.mrb[6].mxu0 %v4612_v21  ;;  %v5065_v21 = vand.u32 4294901760, %v4492_v18 }
 0x26b   : > { %3402 = vmatpush3.bf16.msra.mxu0 %v3401_v7  ;;  %2434 = vmatprep.mubr.f32.mxu0 %v5055_v58 }
 0x26c   : > { %3394 = vmatpush3.bf16.msra.mxu1 %v5056_v61  ;;  %3404 = vmatprep.subr.bf16.mxu0 %v3403_v43 }
 0x26d   : > { %3428 = vmatprep.subr.bf16.mxu1 %v4314_v33  ;;  %v5058_v33 = vand.u32 4294901760, %v4436_v8  ;;  %v5063_v8 = vand.u32 4294901760, %v4475_v28 }
 0x26f   : > { %2257 = vmatmul.mubr.f32.vlgmr.msra.gmra.mrb[4].mxu1 %v5057_v38  ;;  %3406 = vmatpush3.bf16.msra.mxu0 %v4634_v46 }
 0x270   : > { %3430 = vmatpush3.bf16.msra.mxu1 %v4318_v37  ;;  %2264 = vmatprep.mubr.f32.mxu1 %v1754_v15  ;;  %v3415_v37 = vpack.c.bf16 %v5059_v16, %v5058_v33 }
 0x271   : > { %3408 = vmatprep.subr.bf16.mxu0 %v3407_v23  ;;  %3432 = vmatprep.subr.bf16.mxu1 %v4322_v41  ;;  %v5060_v41 = vand.u32 4294901760, %v4451_v0  ;;  %v5066_v0 = vand.u32 4294901760, %v4496_v63 }
 0x273   : > { %2268 = vmatmul.mubr.f32.gmra.mrb[6].mxu1 %v1760_v31  ;;  %3410 = vmatpush3.bf16.msra.mxu0 %v4649_v39  ;;  %v3417_v15 = vpack.c.bf16 %v5061_v57, %v5060_v41 }
 0x274   : > { %3434 = vmatpush3.bf16.msra.mxu1 %v4329_v62  ;;  %3412 = vmatprep.subr.bf16.mxu0 %v4655_v36  ;;  %v5062_v62 = vand.u32 4294901760, %v4466_v52  ;;  %v5068_v52 = vand.u32 4294901760, %v4517_v35 }
 0x275   : > { %3436 = vmatprep.subr.bf16.mxu1 %v4343_v56  ;;  %2545 = vmatprep.mubr.f32.mxu1 %v5055_v58  ;;  %v5064_v56 = vand.u32 4294901760, %v4481_v50 }
 0x276   : > { %v3419_v10 = vpack.c.bf16 %v5063_v8, %v5062_v62 }
 0x277   : > { %3414 = vmatpush3.bf16.msra.mxu0 %v4661_v27  ;;  %v3421_v17 = vpack.c.bf16 %v5065_v21, %v5064_v56 }
 0x278   : > { %3438 = vmatpush3.bf16.msra.mxu1 %v4351_v42  ;;  %3416 = vmatprep.subr.bf16.mxu0 %v3415_v37  ;;  %v5067_v42 = vand.u32 4294901760, %v4508_v25 }
 0x279   : > { %3440 = vmatprep.subr.bf16.mxu1 %v4373_v13  ;;  %v5069_v13 = vand.u32 4294901760, %v4549_v34 }
 0x27a   : > { %v3423_v60 = vpack.c.bf16 %v5067_v42, %v5066_v0 }
 0x27b   : > { %3418 = vmatpush3.bf16.msra.mxu0 %v3417_v15  ;;  %v3425_v28 = vpack.c.bf16 %v5069_v13, %v5068_v52 }
 0x27c   : > { %3442 = vmatpush3.bf16.msra.mxu1 %v4389_v51  ;;  %3420 = vmatprep.subr.bf16.mxu0 %v3419_v10  ;;  %v2632_v51 = vld [vmem:[#allocation5] ss:$0 sm:$0xff] }
 0x27d   : > { %3444 = vmatprep.subr.bf16.mxu1 %v4404_v22 }
 0x27f   : > { %3422 = vmatpush3.bf16.msra.mxu0 %v3421_v17 }
 0x280   : > { %3446 = vmatpush3.bf16.msra.mxu1 %v4419_v54  ;;  %3424 = vmatprep.subr.bf16.mxu0 %v3423_v60 }
 0x281   : > { %3448 = vmatprep.subr.bf16.mxu1 %v5049_v26 }
 0x283   : > { %3426 = vmatpush3.bf16.msra.mxu0 %v3425_v28 }
 0x284   : > { %3450 = vmatpush3.bf16.msra.mxu1 %v5050_v9 }
 0x285   : > { %3452 = vmatprep.subr.bf16.mxu1 %v5051_v12 }
 0x286   : > { %2436 = vmatmul.mubr.f32.vlgmr.msra.gmra.mrb[8].mxu0 %v4532_v45 }
 0x287   : > { %2441 = vmatprep.mubr.f32.mxu0 %v4588_v24 }
 0x288   : > { %3454 = vmatpush3.bf16.msra.mxu1 %v5053_v49 }
 0x289   : > { %3456 = vmatprep.subr.bf16.mxu1 %v5054_v19 }
 0x28a   : > { %2443 = vmatmul.mubr.f32.gmra.mrb[10].mxu0 %v4600_v44 }
 0x28c   : > { %3458 = vmatpush3.bf16.msra.mxu1 %v5056_v61 }
 0x28f   : > { %2547 = vmatmul.mubr.f32.vlgmr.msra.gmra.mrb[8].mxu1 %v4532_v45 }
 0x290   : > { %2552 = vmatprep.mubr.f32.mxu1 %v4588_v24 }
 0x293   : > { %2554 = vmatmul.mubr.f32.gmra.mrb[10].mxu1 %v4600_v44 }
 0x319   : > { %v2879_v35 = vpop.f32.mrb[0].mxu0 }
 0x31a   : > { %v2880_v63 = vpop.f32.mrb[1].mxu0 }
 0x31b   : > { %v2881_v50 = vadd.f32 %v2880_v63, %v2879_v35 }
 0x31d   : > { %v1750_v22 = vadd.f32 %v2881_v50, %v2632_v51 }
 0x322   : > { %v2917_v54 = vpop.f32.mrb[0].mxu1 }
 0x323   : > { %v2918_v18 = vpop.f32.mrb[1].mxu1 }
 0x324   : > { %v2919_v25 = vadd.f32 %v2918_v18, %v2917_v54 }
 0x326   : > { %v1997_v34 = vadd.f32 %v2919_v25, %v1750_v22  ;;  %v2920_v7 = vpop.f32.mrb[2].mxu1 }
 0x327   : > { %v2921_v43 = vpop.f32.mrb[3].mxu1 }
 0x328   : > { %v2882_v46 = vpop.f32.mrb[2].mxu0  ;;  %v2922_v31 = vadd.f32 %v2921_v43, %v2920_v7 }
 0x329   : > { %v2883_v23 = vpop.f32.mrb[3].mxu0 }
 0x32a   : > { %v2884_v39 = vadd.f32 %v2883_v23, %v2882_v46 }
 0x32c   : > { %v1765_v45 = vadd.f32 %v2884_v39, %v2632_v51 }
 0x32e   : > { %v2004_v11 = vadd.f32 %v2922_v31, %v1765_v45 }
 0x339   : > { %v2955_v24 = vpop.f32.mrb[4].mxu0 }
 0x33a   : > { %v2956_v29 = vpop.f32.mrb[5].mxu0 }
 0x33b   : > { %v2957_v44 = vadd.f32 %v2956_v29, %v2955_v24 }
 0x33d   : > { %v2142_v36 = vadd.f32 %v2957_v44, %v1997_v34  ;;  %v2958_v40 = vpop.f32.mrb[6].mxu0 }
 0x33e   : > { %v2959_v2 = vpop.f32.mrb[7].mxu0 }
 0x33f   : > { %v2960_v27 = vadd.f32 %v2959_v2, %v2958_v40 }
 0x341   : > { %v2151_v47 = vadd.f32 %v2960_v27, %v2004_v11 }
 0x342   : > { %v2993_v30 = vpop.f32.mrb[4].mxu1 }
 0x343   : > { %v2994_v14 = vpop.f32.mrb[5].mxu1 }
 0x344   : > { %v2995_v3 = vadd.f32 %v2994_v14, %v2993_v30 }
 0x346   : > { %v2259_v59 = vadd.f32 %v2995_v3, %v2142_v36  ;;  %v2996_v32 = vpop.f32.mrb[6].mxu1 }
 0x347   : > { %v2997_v1 = vpop.f32.mrb[7].mxu1 }
 0x348   : > { %v2998_v5 = vadd.f32 %v2997_v1, %v2996_v32 }
 0x34a   : > { %v2270_v48 = vadd.f32 %v2998_v5, %v2151_v47 }
 0x359   : > { %v3031_v20 = vpop.f32.mrb[8].mxu0 }
 0x35a   : > { %v3032_v4 = vpop.f32.mrb[9].mxu0 }
 0x35b   : > { %v3033_v53 = vadd.f32 %v3032_v4, %v3031_v20 }
 0x35d   : > { %v2438_v6 = vadd.f32 %v3033_v53, %v2259_v59  ;;  %v3034_v26 = vpop.f32.mrb[10].mxu0 }
 0x35e   : > { %v3035_v9 = vpop.f32.mrb[11].mxu0 }
 0x35f   : > { %v3036_v12 = vadd.f32 %v3035_v9, %v3034_v26 }
 0x361   : > { %v2445_v55 = vadd.f32 %v3036_v12, %v2270_v48 }
 0x362   : > { %v3069_v49 = vpop.f32.mrb[8].mxu1 }
 0x363   : > { %v3070_v19 = vpop.f32.mrb[9].mxu1 }
 0x364   : > { %v3071_v58 = vadd.f32 %v3070_v19, %v3069_v49 }
 0x366   : > { %v2549_v61 = vadd.f32 %v3071_v58, %v2438_v6  ;;  %v3072_v38 = vpop.f32.mrb[10].mxu1 }
 0x367   : > { %v3073_v33 = vpop.f32.mrb[11].mxu1 }
 0x368   : > { %2559 = vst [vmem:[%s4786_s5] sm:$0xff] %v2549_v61  ;;  %v3074_v16 = vadd.f32 %v3073_v33, %v3072_v38 }
 0x36a   : > { %v2556_v37 = vadd.f32 %v3074_v16, %v2445_v55 }
 0x36c   : > { %2560 = vst [vmem:[%s4786_s5 + $0x8] sm:$0xff] %v2556_v37 }
 0x36d PF: > { %s15_s20 = sadd.s32 1, %s3515_s20   ;;  %s5070_s18 = smov %s3511_s19 }
 0x36e   : > { %p12_p6 = scmp.ge.s32.totalorder %s15_s20, 4   ;;  %s5071_s19 = smov %s5073_s21 }
 0x370   :  { %14 = sbr.rel (!%p12_p6) target bundleno = 2 (0x2), region = 86 }

</bundles_post_ra>
